<compile_context>
chip_gen: v7x
topology: tpu7x:2x2x1
jax: 0.10.0
libtpu: 0.0.40
codegen_flags: <defaults>
</compile_context>

<pallas_src>
import functools

import jax
import jax.numpy as jnp
from jax.experimental import pallas as pl
from jax.experimental.pallas import tpu as pltpu

# Channel plan of the torch module: 8 -> 16 -> 32 -> 16 -> 8, all 2x2 kernels.
_LAYER_IO = ((8, 16), (16, 32), (32, 16), (16, 8))
_KHW = 2


def _shift_lanes(x, off):
    """out[:, i] = x[:, i + off] (wrap-around).

    Wrapped / cross-row entries only ever feed output pixels that are cropped
    away (implicit-padding trick).  Lowers to an XLU lane rotation.
    """
    if off == 0:
        return x
    return jnp.concatenate([x[:, off:], x[:, :off]], axis=1)


def _convnet_kernel(x_ref, w_ref, o_ref, *, width, height, layer_io):
    """Fused conv0..conv3 forward, channels-in-sublanes / pixels-in-lanes.

    x_ref: (N, C0, H*W)   per image: channel rows, flat (h*W + w) pixel lanes
    w_ref: (L, 32, 129)   w_ref[l, :Co, :4*Ci] = im2col weight matrix,
                          w_ref[l, :Co, 4*Ci]  = bias
    o_ref: (N, C_out, Ho*Wo)  already cropped to the valid region
    """
    n_batch = x_ref.shape[0]
    n_layers = len(layer_io)
    ho = height - n_layers        # 12
    wo = width - n_layers         # 12
    # Tap offsets of a 2x2 window on the flat pixel axis, in (kh, kw) order
    # matching the host-side weight packing: (0,0), (0,1), (1,0), (1,1).
    offs = (0, 1, width, width + 1)

    for n in range(n_batch):
        act = x_ref[n]                                           # (C0, H*W)
        for l, (ci, co) in enumerate(layer_io):
            # im2col: stack the 4 shifted copies along the contraction axis so
            # the whole layer is a single MXU matmul with K = 4*Ci.
            x_aug = jnp.concatenate(
                [_shift_lanes(act, off) for off in offs], axis=0)  # (4Ci, HW)
            w_mat = w_ref[l, :co, :4 * ci]                         # (Co, 4Ci)
            b_col = w_ref[l, :co, 4 * ci:4 * ci + 1]               # (Co, 1)
            act = jnp.dot(w_mat, x_aug,
                          preferred_element_type=jnp.float32) + b_col

        # act: (C_out, H*W).  After 4 layers only pixels with h < ho, w < wo
        # are valid conv outputs (receptive field fully inside the image); the
        # crop happens here so the wrapper needs no epilogue ops.  The store is
        # lane-dense (144-wide).
        o_ref[n] = jnp.concatenate(
            [act[:, h * width:h * width + wo] for h in range(ho)], axis=1)


def convnet_forward(x, params):
    """x: (N, 8, H, W) float32 NCHW; params: [(w (Co,Ci,2,2), b (Co,)) x 4].

    Returns (N, 8, H-4, W-4) float32, matching ConvNet.forward on one device.
    """
    n, c0, h, w = x.shape
    layer_io = tuple((wt.shape[1], wt.shape[0]) for wt, _ in params)
    n_layers = len(params)
    ho, wo = h - n_layers, w - n_layers
    c_out = layer_io[-1][1]

    # Static sanity checks for the implicit-padding trick: the kernel assumes
    # 2x2 stride-1 VALID convs chained on the same flat pixel grid.
    assert layer_io[0][0] == c0
    for (ci_next, _), (_, co_prev) in zip(layer_io[1:], layer_io[:-1]):
        assert ci_next == co_prev
    for wt, _ in params:
        assert wt.shape[2:] == (_KHW, _KHW), "kernel assumes 2x2 convs"
    assert ho >= 1 and wo >= 1

    # --- operand packing (all tiny; fused by XLA) ---------------------------
    # NCHW -> (N, C, H*W) is a free bitcast reshape.
    x3d = x.reshape(n, c0, h * w)

    # One packed weight+bias constant => one HBM->VMEM DMA instead of eight.
    # w_all[l, :Co, :4*Ci] is the (Co, 4*Ci) im2col weight matrix with column
    # index (kh*2 + kw)*Ci + ci (matching the tap stacking in the kernel);
    # w_all[l, :Co, 4*Ci] is the bias.
    max_co = max(co for _, co in layer_io)
    max_k = max(_KHW * _KHW * ci for ci, _ in layer_io)
    w_all = jnp.zeros((n_layers, max_co, max_k + 1), jnp.float32)
    for l, (wt, bias) in enumerate(params):
        co, ci, kh, kw = wt.shape
        wmat = jnp.transpose(wt, (0, 2, 3, 1)).reshape(co, kh * kw * ci)
        w_all = w_all.at[l, :co, :kh * kw * ci].set(wmat.astype(jnp.float32))
        w_all = w_all.at[l, :co, kh * kw * ci].set(bias.astype(jnp.float32))

    vmem = pl.BlockSpec(memory_space=pltpu.MemorySpace.VMEM)
    y = pl.pallas_call(
        functools.partial(_convnet_kernel, width=w, height=h,
                          layer_io=layer_io),
        out_shape=jax.ShapeDtypeStruct((n, c_out, ho * wo), jnp.float32),
        in_specs=[vmem, vmem],
        out_specs=vmem,
    )(x3d, w_all)

    # Free bitcast reshape back to NCHW; no pad / slice / transpose epilogue.
    return y.reshape(n, c_out, ho, wo)


if __name__ == "__main__":
    key = jax.random.PRNGKey(0)
    k_x, *k_params = jax.random.split(key, 1 + 2 * len(_LAYER_IO))

    n, h, w = 2, 16, 16
    x = jax.random.normal(k_x, (n, _LAYER_IO[0][0], h, w), dtype=jnp.float32)

    # Deterministic parameters in the same range as PyTorch Conv2d default init.
    params = []
    for i, (ci, co) in enumerate(_LAYER_IO):
        bound = (1.0 / (ci * _KHW * _KHW)) ** 0.5
        wt = jax.random.uniform(k_params[2 * i], (co, ci, _KHW, _KHW),
                                jnp.float32, -bound, bound)
        bias = jax.random.uniform(k_params[2 * i + 1], (co,),
                                  jnp.float32, -bound, bound)
        params.append((wt, bias))

    fwd = jax.jit(convnet_forward)
    out = jax.block_until_ready(fwd(x, params))

    # Pure-JAX reference: chain of VALID 2x2 convs + bias (NCHW / OIHW), run at
    # highest precision so the comparison is against accurate values.
    ref = x
    for wt, bias in params:
        ref = jax.lax.conv_general_dilated(
            ref, wt, window_strides=(1, 1), padding="VALID",
            dimension_numbers=("NCHW", "OIHW", "NCHW"),
            precision=jax.lax.Precision.HIGHEST)
        ref = ref + bias[None, :, None, None]

    assert out.shape == (n, 8, h - 4, w - 4), out.shape
    assert out.dtype == jnp.float32
    max_err = float(jnp.max(jnp.abs(out - ref)))
    assert jnp.allclose(out, ref, atol=1e-2, rtol=1e-2), max_err
    print("KERNEL_OK")
</pallas_src>

<mosaic_0001>
module attributes {stable_mosaic.version = 11 : i64} {
  func.func @_convnet_kernel(%arg0: memref<2x8x256xf32, #tpu.memory_space<vmem>>, %arg1: memref<4x32x129xf32, #tpu.memory_space<vmem>>, %arg2: memref<2x8x144xf32, #tpu.memory_space<vmem>>) attributes {dimension_semantics = [], scalar_prefetch = 0 : i64, scratch_operands = 0 : i64, tpu.core_type = #tpu.core_type<tc>} {
    %c0 = arith.constant 0 : index
    %c0_0 = arith.constant 0 : index
    %c0_1 = arith.constant 0 : index
    %0 = vector.load %arg0[%c0, %c0_0, %c0_1] : memref<2x8x256xf32, #tpu.memory_space<vmem>>, vector<1x8x256xf32>
    %1 = vector.shape_cast %0 : vector<1x8x256xf32> to vector<8x256xf32>
    %2 = vector.extract_strided_slice %1 {offsets = [0, 1], sizes = [8, 255], strides = [1, 1]} : vector<8x256xf32> to vector<8x255xf32>
    %3 = vector.extract_strided_slice %1 {offsets = [0, 0], sizes = [8, 1], strides = [1, 1]} : vector<8x256xf32> to vector<8x1xf32>
    %4 = tpu.concatenate %2, %3 in 1 : vector<8x255xf32>, vector<8x1xf32> -> vector<8x256xf32>
    %5 = vector.extract_strided_slice %1 {offsets = [0, 16], sizes = [8, 240], strides = [1, 1]} : vector<8x256xf32> to vector<8x240xf32>
    %6 = vector.extract_strided_slice %1 {offsets = [0, 0], sizes = [8, 16], strides = [1, 1]} : vector<8x256xf32> to vector<8x16xf32>
    %7 = tpu.concatenate %5, %6 in 1 : vector<8x240xf32>, vector<8x16xf32> -> vector<8x256xf32>
    %8 = vector.extract_strided_slice %1 {offsets = [0, 17], sizes = [8, 239], strides = [1, 1]} : vector<8x256xf32> to vector<8x239xf32>
    %9 = vector.extract_strided_slice %1 {offsets = [0, 0], sizes = [8, 17], strides = [1, 1]} : vector<8x256xf32> to vector<8x17xf32>
    %10 = tpu.concatenate %8, %9 in 1 : vector<8x239xf32>, vector<8x17xf32> -> vector<8x256xf32>
    %11 = tpu.concatenate %1, %4, %7, %10 in 0 : vector<8x256xf32>, vector<8x256xf32>, vector<8x256xf32>, vector<8x256xf32> -> vector<32x256xf32>
    %c0_2 = arith.constant 0 : index
    %c0_3 = arith.constant 0 : index
    %c0_4 = arith.constant 0 : index
    %12 = vector.load %arg1[%c0_2, %c0_3, %c0_4] : memref<4x32x129xf32, #tpu.memory_space<vmem>>, vector<1x16x32xf32>
    %13 = vector.shape_cast %12 : vector<1x16x32xf32> to vector<16x32xf32>
    %c0_5 = arith.constant 0 : index
    %c0_6 = arith.constant 0 : index
    %c32 = arith.constant 32 : index
    %14 = vector.load %arg1[%c0_5, %c0_6, %c32] : memref<4x32x129xf32, #tpu.memory_space<vmem>>, vector<1x16x1xf32>
    %15 = vector.shape_cast %14 : vector<1x16x1xf32> to vector<16x1xf32>
    %cst = arith.constant dense<0.000000e+00> : vector<16x256xf32>
    %16 = tpu.matmul %13, %11, %cst {dimension_numbers = #tpu.dot_dimension_numbers<[1], [0], [0], [1], [0, 0, 1, 1], [], []>} : vector<16x32xf32>, vector<32x256xf32>, vector<16x256xf32> -> vector<16x256xf32>
    %17 = vector.broadcast %15 : vector<16x1xf32> to vector<16x256xf32>
    %18 = arith.addf %16, %17 : vector<16x256xf32>
    %19 = vector.extract_strided_slice %18 {offsets = [0, 1], sizes = [16, 255], strides = [1, 1]} : vector<16x256xf32> to vector<16x255xf32>
    %20 = vector.extract_strided_slice %18 {offsets = [0, 0], sizes = [16, 1], strides = [1, 1]} : vector<16x256xf32> to vector<16x1xf32>
    %21 = tpu.concatenate %19, %20 in 1 : vector<16x255xf32>, vector<16x1xf32> -> vector<16x256xf32>
    %22 = vector.extract_strided_slice %18 {offsets = [0, 16], sizes = [16, 240], strides = [1, 1]} : vector<16x256xf32> to vector<16x240xf32>
    %23 = vector.extract_strided_slice %18 {offsets = [0, 0], sizes = [16, 16], strides = [1, 1]} : vector<16x256xf32> to vector<16x16xf32>
    %24 = tpu.concatenate %22, %23 in 1 : vector<16x240xf32>, vector<16x16xf32> -> vector<16x256xf32>
    %25 = vector.extract_strided_slice %18 {offsets = [0, 17], sizes = [16, 239], strides = [1, 1]} : vector<16x256xf32> to vector<16x239xf32>
    %26 = vector.extract_strided_slice %18 {offsets = [0, 0], sizes = [16, 17], strides = [1, 1]} : vector<16x256xf32> to vector<16x17xf32>
    %27 = tpu.concatenate %25, %26 in 1 : vector<16x239xf32>, vector<16x17xf32> -> vector<16x256xf32>
    %28 = tpu.concatenate %18, %21, %24, %27 in 0 : vector<16x256xf32>, vector<16x256xf32>, vector<16x256xf32>, vector<16x256xf32> -> vector<64x256xf32>
    %c1 = arith.constant 1 : index
    %c0_7 = arith.constant 0 : index
    %c0_8 = arith.constant 0 : index
    %29 = vector.load %arg1[%c1, %c0_7, %c0_8] : memref<4x32x129xf32, #tpu.memory_space<vmem>>, vector<1x32x64xf32>
    %30 = vector.shape_cast %29 : vector<1x32x64xf32> to vector<32x64xf32>
    %c1_9 = arith.constant 1 : index
    %c0_10 = arith.constant 0 : index
    %c64 = arith.constant 64 : index
    %31 = vector.load %arg1[%c1_9, %c0_10, %c64] : memref<4x32x129xf32, #tpu.memory_space<vmem>>, vector<1x32x1xf32>
    %32 = vector.shape_cast %31 : vector<1x32x1xf32> to vector<32x1xf32>
    %cst_11 = arith.constant dense<0.000000e+00> : vector<32x256xf32>
    %33 = tpu.matmul %30, %28, %cst_11 {dimension_numbers = #tpu.dot_dimension_numbers<[1], [0], [0], [1], [0, 0, 1, 1], [], []>} : vector<32x64xf32>, vector<64x256xf32>, vector<32x256xf32> -> vector<32x256xf32>
    %34 = vector.broadcast %32 : vector<32x1xf32> to vector<32x256xf32>
    %35 = arith.addf %33, %34 : vector<32x256xf32>
    %36 = vector.extract_strided_slice %35 {offsets = [0, 1], sizes = [32, 255], strides = [1, 1]} : vector<32x256xf32> to vector<32x255xf32>
    %37 = vector.extract_strided_slice %35 {offsets = [0, 0], sizes = [32, 1], strides = [1, 1]} : vector<32x256xf32> to vector<32x1xf32>
    %38 = tpu.concatenate %36, %37 in 1 : vector<32x255xf32>, vector<32x1xf32> -> vector<32x256xf32>
    %39 = vector.extract_strided_slice %35 {offsets = [0, 16], sizes = [32, 240], strides = [1, 1]} : vector<32x256xf32> to vector<32x240xf32>
    %40 = vector.extract_strided_slice %35 {offsets = [0, 0], sizes = [32, 16], strides = [1, 1]} : vector<32x256xf32> to vector<32x16xf32>
    %41 = tpu.concatenate %39, %40 in 1 : vector<32x240xf32>, vector<32x16xf32> -> vector<32x256xf32>
    %42 = vector.extract_strided_slice %35 {offsets = [0, 17], sizes = [32, 239], strides = [1, 1]} : vector<32x256xf32> to vector<32x239xf32>
    %43 = vector.extract_strided_slice %35 {offsets = [0, 0], sizes = [32, 17], strides = [1, 1]} : vector<32x256xf32> to vector<32x17xf32>
    %44 = tpu.concatenate %42, %43 in 1 : vector<32x239xf32>, vector<32x17xf32> -> vector<32x256xf32>
    %45 = tpu.concatenate %35, %38, %41, %44 in 0 : vector<32x256xf32>, vector<32x256xf32>, vector<32x256xf32>, vector<32x256xf32> -> vector<128x256xf32>
    %c2 = arith.constant 2 : index
    %c0_12 = arith.constant 0 : index
    %c0_13 = arith.constant 0 : index
    %46 = vector.load %arg1[%c2, %c0_12, %c0_13] : memref<4x32x129xf32, #tpu.memory_space<vmem>>, vector<1x16x128xf32>
    %47 = vector.shape_cast %46 : vector<1x16x128xf32> to vector<16x128xf32>
    %c2_14 = arith.constant 2 : index
    %c0_15 = arith.constant 0 : index
    %c128 = arith.constant 128 : index
    %48 = vector.load %arg1[%c2_14, %c0_15, %c128] : memref<4x32x129xf32, #tpu.memory_space<vmem>>, vector<1x16x1xf32>
    %49 = vector.shape_cast %48 : vector<1x16x1xf32> to vector<16x1xf32>
    %cst_16 = arith.constant dense<0.000000e+00> : vector<16x256xf32>
    %50 = tpu.matmul %47, %45, %cst_16 {dimension_numbers = #tpu.dot_dimension_numbers<[1], [0], [0], [1], [0, 0, 1, 1], [], []>} : vector<16x128xf32>, vector<128x256xf32>, vector<16x256xf32> -> vector<16x256xf32>
    %51 = vector.broadcast %49 : vector<16x1xf32> to vector<16x256xf32>
    %52 = arith.addf %50, %51 : vector<16x256xf32>
    %53 = vector.extract_strided_slice %52 {offsets = [0, 1], sizes = [16, 255], strides = [1, 1]} : vector<16x256xf32> to vector<16x255xf32>
    %54 = vector.extract_strided_slice %52 {offsets = [0, 0], sizes = [16, 1], strides = [1, 1]} : vector<16x256xf32> to vector<16x1xf32>
    %55 = tpu.concatenate %53, %54 in 1 : vector<16x255xf32>, vector<16x1xf32> -> vector<16x256xf32>
    %56 = vector.extract_strided_slice %52 {offsets = [0, 16], sizes = [16, 240], strides = [1, 1]} : vector<16x256xf32> to vector<16x240xf32>
    %57 = vector.extract_strided_slice %52 {offsets = [0, 0], sizes = [16, 16], strides = [1, 1]} : vector<16x256xf32> to vector<16x16xf32>
    %58 = tpu.concatenate %56, %57 in 1 : vector<16x240xf32>, vector<16x16xf32> -> vector<16x256xf32>
    %59 = vector.extract_strided_slice %52 {offsets = [0, 17], sizes = [16, 239], strides = [1, 1]} : vector<16x256xf32> to vector<16x239xf32>
    %60 = vector.extract_strided_slice %52 {offsets = [0, 0], sizes = [16, 17], strides = [1, 1]} : vector<16x256xf32> to vector<16x17xf32>
    %61 = tpu.concatenate %59, %60 in 1 : vector<16x239xf32>, vector<16x17xf32> -> vector<16x256xf32>
    %62 = tpu.concatenate %52, %55, %58, %61 in 0 : vector<16x256xf32>, vector<16x256xf32>, vector<16x256xf32>, vector<16x256xf32> -> vector<64x256xf32>
    %c3 = arith.constant 3 : index
    %c0_17 = arith.constant 0 : index
    %c0_18 = arith.constant 0 : index
    %63 = vector.load %arg1[%c3, %c0_17, %c0_18] : memref<4x32x129xf32, #tpu.memory_space<vmem>>, vector<1x8x64xf32>
    %64 = vector.shape_cast %63 : vector<1x8x64xf32> to vector<8x64xf32>
    %c3_19 = arith.constant 3 : index
    %c0_20 = arith.constant 0 : index
    %c64_21 = arith.constant 64 : index
    %65 = vector.load %arg1[%c3_19, %c0_20, %c64_21] : memref<4x32x129xf32, #tpu.memory_space<vmem>>, vector<1x8x1xf32>
    %66 = vector.shape_cast %65 : vector<1x8x1xf32> to vector<8x1xf32>
    %cst_22 = arith.constant dense<0.000000e+00> : vector<8x256xf32>
    %67 = tpu.matmul %64, %62, %cst_22 {dimension_numbers = #tpu.dot_dimension_numbers<[1], [0], [0], [1], [0, 0, 1, 1], [], []>} : vector<8x64xf32>, vector<64x256xf32>, vector<8x256xf32> -> vector<8x256xf32>
    %68 = vector.broadcast %66 : vector<8x1xf32> to vector<8x256xf32>
    %69 = arith.addf %67, %68 : vector<8x256xf32>
    %70 = vector.extract_strided_slice %69 {offsets = [0, 0], sizes = [8, 12], strides = [1, 1]} : vector<8x256xf32> to vector<8x12xf32>
    %71 = vector.extract_strided_slice %69 {offsets = [0, 16], sizes = [8, 12], strides = [1, 1]} : vector<8x256xf32> to vector<8x12xf32>
    %72 = vector.extract_strided_slice %69 {offsets = [0, 32], sizes = [8, 12], strides = [1, 1]} : vector<8x256xf32> to vector<8x12xf32>
    %73 = vector.extract_strided_slice %69 {offsets = [0, 48], sizes = [8, 12], strides = [1, 1]} : vector<8x256xf32> to vector<8x12xf32>
    %74 = vector.extract_strided_slice %69 {offsets = [0, 64], sizes = [8, 12], strides = [1, 1]} : vector<8x256xf32> to vector<8x12xf32>
    %75 = vector.extract_strided_slice %69 {offsets = [0, 80], sizes = [8, 12], strides = [1, 1]} : vector<8x256xf32> to vector<8x12xf32>
    %76 = vector.extract_strided_slice %69 {offsets = [0, 96], sizes = [8, 12], strides = [1, 1]} : vector<8x256xf32> to vector<8x12xf32>
    %77 = vector.extract_strided_slice %69 {offsets = [0, 112], sizes = [8, 12], strides = [1, 1]} : vector<8x256xf32> to vector<8x12xf32>
    %78 = vector.extract_strided_slice %69 {offsets = [0, 128], sizes = [8, 12], strides = [1, 1]} : vector<8x256xf32> to vector<8x12xf32>
    %79 = vector.extract_strided_slice %69 {offsets = [0, 144], sizes = [8, 12], strides = [1, 1]} : vector<8x256xf32> to vector<8x12xf32>
    %80 = vector.extract_strided_slice %69 {offsets = [0, 160], sizes = [8, 12], strides = [1, 1]} : vector<8x256xf32> to vector<8x12xf32>
    %81 = vector.extract_strided_slice %69 {offsets = [0, 176], sizes = [8, 12], strides = [1, 1]} : vector<8x256xf32> to vector<8x12xf32>
    %82 = tpu.concatenate %70, %71, %72, %73, %74, %75, %76, %77, %78, %79, %80, %81 in 1 : vector<8x12xf32>, vector<8x12xf32>, vector<8x12xf32>, vector<8x12xf32>, vector<8x12xf32>, vector<8x12xf32>, vector<8x12xf32>, vector<8x12xf32>, vector<8x12xf32>, vector<8x12xf32>, vector<8x12xf32>, vector<8x12xf32> -> vector<8x144xf32>
    %c0_23 = arith.constant 0 : index
    %c0_24 = arith.constant 0 : index
    %c0_25 = arith.constant 0 : index
    %83 = vector.load %arg2[%c0_23, %c0_24, %c0_25] : memref<2x8x144xf32, #tpu.memory_space<vmem>>, vector<1x8x144xf32>
    %84 = vector.shape_cast %83 : vector<1x8x144xf32> to vector<8x144xf32>
    %85 = vector.shape_cast %82 : vector<8x144xf32> to vector<1x8x144xf32>
    tpu.vector_store %arg2[%c0_23, %c0_24, %c0_25], %85 {strides = array<i32>} : memref<2x8x144xf32, #tpu.memory_space<vmem>>, vector<1x8x144xf32>,
    %c1_26 = arith.constant 1 : index
    %c0_27 = arith.constant 0 : index
    %c0_28 = arith.constant 0 : index
    %86 = vector.load %arg0[%c1_26, %c0_27, %c0_28] : memref<2x8x256xf32, #tpu.memory_space<vmem>>, vector<1x8x256xf32>
    %87 = vector.shape_cast %86 : vector<1x8x256xf32> to vector<8x256xf32>
    %88 = vector.extract_strided_slice %87 {offsets = [0, 1], sizes = [8, 255], strides = [1, 1]} : vector<8x256xf32> to vector<8x255xf32>
    %89 = vector.extract_strided_slice %87 {offsets = [0, 0], sizes = [8, 1], strides = [1, 1]} : vector<8x256xf32> to vector<8x1xf32>
    %90 = tpu.concatenate %88, %89 in 1 : vector<8x255xf32>, vector<8x1xf32> -> vector<8x256xf32>
    %91 = vector.extract_strided_slice %87 {offsets = [0, 16], sizes = [8, 240], strides = [1, 1]} : vector<8x256xf32> to vector<8x240xf32>
    %92 = vector.extract_strided_slice %87 {offsets = [0, 0], sizes = [8, 16], strides = [1, 1]} : vector<8x256xf32> to vector<8x16xf32>
    %93 = tpu.concatenate %91, %92 in 1 : vector<8x240xf32>, vector<8x16xf32> -> vector<8x256xf32>
    %94 = vector.extract_strided_slice %87 {offsets = [0, 17], sizes = [8, 239], strides = [1, 1]} : vector<8x256xf32> to vector<8x239xf32>
    %95 = vector.extract_strided_slice %87 {offsets = [0, 0], sizes = [8, 17], strides = [1, 1]} : vector<8x256xf32> to vector<8x17xf32>
    %96 = tpu.concatenate %94, %95 in 1 : vector<8x239xf32>, vector<8x17xf32> -> vector<8x256xf32>
    %97 = tpu.concatenate %87, %90, %93, %96 in 0 : vector<8x256xf32>, vector<8x256xf32>, vector<8x256xf32>, vector<8x256xf32> -> vector<32x256xf32>
    %c0_29 = arith.constant 0 : index
    %c0_30 = arith.constant 0 : index
    %c0_31 = arith.constant 0 : index
    %98 = vector.load %arg1[%c0_29, %c0_30, %c0_31] : memref<4x32x129xf32, #tpu.memory_space<vmem>>, vector<1x16x32xf32>
    %99 = vector.shape_cast %98 : vector<1x16x32xf32> to vector<16x32xf32>
    %c0_32 = arith.constant 0 : index
    %c0_33 = arith.constant 0 : index
    %c32_34 = arith.constant 32 : index
    %100 = vector.load %arg1[%c0_32, %c0_33, %c32_34] : memref<4x32x129xf32, #tpu.memory_space<vmem>>, vector<1x16x1xf32>
    %101 = vector.shape_cast %100 : vector<1x16x1xf32> to vector<16x1xf32>
    %cst_35 = arith.constant dense<0.000000e+00> : vector<16x256xf32>
    %102 = tpu.matmul %99, %97, %cst_35 {dimension_numbers = #tpu.dot_dimension_numbers<[1], [0], [0], [1], [0, 0, 1, 1], [], []>} : vector<16x32xf32>, vector<32x256xf32>, vector<16x256xf32> -> vector<16x256xf32>
    %103 = vector.broadcast %101 : vector<16x1xf32> to vector<16x256xf32>
    %104 = arith.addf %102, %103 : vector<16x256xf32>
    %105 = vector.extract_strided_slice %104 {offsets = [0, 1], sizes = [16, 255], strides = [1, 1]} : vector<16x256xf32> to vector<16x255xf32>
    %106 = vector.extract_strided_slice %104 {offsets = [0, 0], sizes = [16, 1], strides = [1, 1]} : vector<16x256xf32> to vector<16x1xf32>
    %107 = tpu.concatenate %105, %106 in 1 : vector<16x255xf32>, vector<16x1xf32> -> vector<16x256xf32>
    %108 = vector.extract_strided_slice %104 {offsets = [0, 16], sizes = [16, 240], strides = [1, 1]} : vector<16x256xf32> to vector<16x240xf32>
    %109 = vector.extract_strided_slice %104 {offsets = [0, 0], sizes = [16, 16], strides = [1, 1]} : vector<16x256xf32> to vector<16x16xf32>
    %110 = tpu.concatenate %108, %109 in 1 : vector<16x240xf32>, vector<16x16xf32> -> vector<16x256xf32>
    %111 = vector.extract_strided_slice %104 {offsets = [0, 17], sizes = [16, 239], strides = [1, 1]} : vector<16x256xf32> to vector<16x239xf32>
    %112 = vector.extract_strided_slice %104 {offsets = [0, 0], sizes = [16, 17], strides = [1, 1]} : vector<16x256xf32> to vector<16x17xf32>
    %113 = tpu.concatenate %111, %112 in 1 : vector<16x239xf32>, vector<16x17xf32> -> vector<16x256xf32>
    %114 = tpu.concatenate %104, %107, %110, %113 in 0 : vector<16x256xf32>, vector<16x256xf32>, vector<16x256xf32>, vector<16x256xf32> -> vector<64x256xf32>
    %c1_36 = arith.constant 1 : index
    %c0_37 = arith.constant 0 : index
    %c0_38 = arith.constant 0 : index
    %115 = vector.load %arg1[%c1_36, %c0_37, %c0_38] : memref<4x32x129xf32, #tpu.memory_space<vmem>>, vector<1x32x64xf32>
    %116 = vector.shape_cast %115 : vector<1x32x64xf32> to vector<32x64xf32>
    %c1_39 = arith.constant 1 : index
    %c0_40 = arith.constant 0 : index
    %c64_41 = arith.constant 64 : index
    %117 = vector.load %arg1[%c1_39, %c0_40, %c64_41] : memref<4x32x129xf32, #tpu.memory_space<vmem>>, vector<1x32x1xf32>
    %118 = vector.shape_cast %117 : vector<1x32x1xf32> to vector<32x1xf32>
    %cst_42 = arith.constant dense<0.000000e+00> : vector<32x256xf32>
    %119 = tpu.matmul %116, %114, %cst_42 {dimension_numbers = #tpu.dot_dimension_numbers<[1], [0], [0], [1], [0, 0, 1, 1], [], []>} : vector<32x64xf32>, vector<64x256xf32>, vector<32x256xf32> -> vector<32x256xf32>
    %120 = vector.broadcast %118 : vector<32x1xf32> to vector<32x256xf32>
    %121 = arith.addf %119, %120 : vector<32x256xf32>
    %122 = vector.extract_strided_slice %121 {offsets = [0, 1], sizes = [32, 255], strides = [1, 1]} : vector<32x256xf32> to vector<32x255xf32>
    %123 = vector.extract_strided_slice %121 {offsets = [0, 0], sizes = [32, 1], strides = [1, 1]} : vector<32x256xf32> to vector<32x1xf32>
    %124 = tpu.concatenate %122, %123 in 1 : vector<32x255xf32>, vector<32x1xf32> -> vector<32x256xf32>
    %125 = vector.extract_strided_slice %121 {offsets = [0, 16], sizes = [32, 240], strides = [1, 1]} : vector<32x256xf32> to vector<32x240xf32>
    %126 = vector.extract_strided_slice %121 {offsets = [0, 0], sizes = [32, 16], strides = [1, 1]} : vector<32x256xf32> to vector<32x16xf32>
    %127 = tpu.concatenate %125, %126 in 1 : vector<32x240xf32>, vector<32x16xf32> -> vector<32x256xf32>
    %128 = vector.extract_strided_slice %121 {offsets = [0, 17], sizes = [32, 239], strides = [1, 1]} : vector<32x256xf32> to vector<32x239xf32>
    %129 = vector.extract_strided_slice %121 {offsets = [0, 0], sizes = [32, 17], strides = [1, 1]} : vector<32x256xf32> to vector<32x17xf32>
    %130 = tpu.concatenate %128, %129 in 1 : vector<32x239xf32>, vector<32x17xf32> -> vector<32x256xf32>
    %131 = tpu.concatenate %121, %124, %127, %130 in 0 : vector<32x256xf32>, vector<32x256xf32>, vector<32x256xf32>, vector<32x256xf32> -> vector<128x256xf32>
    %c2_43 = arith.constant 2 : index
    %c0_44 = arith.constant 0 : index
    %c0_45 = arith.constant 0 : index
    %132 = vector.load %arg1[%c2_43, %c0_44, %c0_45] : memref<4x32x129xf32, #tpu.memory_space<vmem>>, vector<1x16x128xf32>
    %133 = vector.shape_cast %132 : vector<1x16x128xf32> to vector<16x128xf32>
    %c2_46 = arith.constant 2 : index
    %c0_47 = arith.constant 0 : index
    %c128_48 = arith.constant 128 : index
    %134 = vector.load %arg1[%c2_46, %c0_47, %c128_48] : memref<4x32x129xf32, #tpu.memory_space<vmem>>, vector<1x16x1xf32>
    %135 = vector.shape_cast %134 : vector<1x16x1xf32> to vector<16x1xf32>
    %cst_49 = arith.constant dense<0.000000e+00> : vector<16x256xf32>
    %136 = tpu.matmul %133, %131, %cst_49 {dimension_numbers = #tpu.dot_dimension_numbers<[1], [0], [0], [1], [0, 0, 1, 1], [], []>} : vector<16x128xf32>, vector<128x256xf32>, vector<16x256xf32> -> vector<16x256xf32>
    %137 = vector.broadcast %135 : vector<16x1xf32> to vector<16x256xf32>
    %138 = arith.addf %136, %137 : vector<16x256xf32>
    %139 = vector.extract_strided_slice %138 {offsets = [0, 1], sizes = [16, 255], strides = [1, 1]} : vector<16x256xf32> to vector<16x255xf32>
    %140 = vector.extract_strided_slice %138 {offsets = [0, 0], sizes = [16, 1], strides = [1, 1]} : vector<16x256xf32> to vector<16x1xf32>
    %141 = tpu.concatenate %139, %140 in 1 : vector<16x255xf32>, vector<16x1xf32> -> vector<16x256xf32>
    %142 = vector.extract_strided_slice %138 {offsets = [0, 16], sizes = [16, 240], strides = [1, 1]} : vector<16x256xf32> to vector<16x240xf32>
    %143 = vector.extract_strided_slice %138 {offsets = [0, 0], sizes = [16, 16], strides = [1, 1]} : vector<16x256xf32> to vector<16x16xf32>
    %144 = tpu.concatenate %142, %143 in 1 : vector<16x240xf32>, vector<16x16xf32> -> vector<16x256xf32>
    %145 = vector.extract_strided_slice %138 {offsets = [0, 17], sizes = [16, 239], strides = [1, 1]} : vector<16x256xf32> to vector<16x239xf32>
    %146 = vector.extract_strided_slice %138 {offsets = [0, 0], sizes = [16, 17], strides = [1, 1]} : vector<16x256xf32> to vector<16x17xf32>
    %147 = tpu.concatenate %145, %146 in 1 : vector<16x239xf32>, vector<16x17xf32> -> vector<16x256xf32>
    %148 = tpu.concatenate %138, %141, %144, %147 in 0 : vector<16x256xf32>, vector<16x256xf32>, vector<16x256xf32>, vector<16x256xf32> -> vector<64x256xf32>
    %c3_50 = arith.constant 3 : index
    %c0_51 = arith.constant 0 : index
    %c0_52 = arith.constant 0 : index
    %149 = vector.load %arg1[%c3_50, %c0_51, %c0_52] : memref<4x32x129xf32, #tpu.memory_space<vmem>>, vector<1x8x64xf32>
    %150 = vector.shape_cast %149 : vector<1x8x64xf32> to vector<8x64xf32>
    %c3_53 = arith.constant 3 : index
    %c0_54 = arith.constant 0 : index
    %c64_55 = arith.constant 64 : index
    %151 = vector.load %arg1[%c3_53, %c0_54, %c64_55] : memref<4x32x129xf32, #tpu.memory_space<vmem>>, vector<1x8x1xf32>
    %152 = vector.shape_cast %151 : vector<1x8x1xf32> to vector<8x1xf32>
    %cst_56 = arith.constant dense<0.000000e+00> : vector<8x256xf32>
    %153 = tpu.matmul %150, %148, %cst_56 {dimension_numbers = #tpu.dot_dimension_numbers<[1], [0], [0], [1], [0, 0, 1, 1], [], []>} : vector<8x64xf32>, vector<64x256xf32>, vector<8x256xf32> -> vector<8x256xf32>
    %154 = vector.broadcast %152 : vector<8x1xf32> to vector<8x256xf32>
    %155 = arith.addf %153, %154 : vector<8x256xf32>
    %156 = vector.extract_strided_slice %155 {offsets = [0, 0], sizes = [8, 12], strides = [1, 1]} : vector<8x256xf32> to vector<8x12xf32>
    %157 = vector.extract_strided_slice %155 {offsets = [0, 16], sizes = [8, 12], strides = [1, 1]} : vector<8x256xf32> to vector<8x12xf32>
    %158 = vector.extract_strided_slice %155 {offsets = [0, 32], sizes = [8, 12], strides = [1, 1]} : vector<8x256xf32> to vector<8x12xf32>
    %159 = vector.extract_strided_slice %155 {offsets = [0, 48], sizes = [8, 12], strides = [1, 1]} : vector<8x256xf32> to vector<8x12xf32>
    %160 = vector.extract_strided_slice %155 {offsets = [0, 64], sizes = [8, 12], strides = [1, 1]} : vector<8x256xf32> to vector<8x12xf32>
    %161 = vector.extract_strided_slice %155 {offsets = [0, 80], sizes = [8, 12], strides = [1, 1]} : vector<8x256xf32> to vector<8x12xf32>
    %162 = vector.extract_strided_slice %155 {offsets = [0, 96], sizes = [8, 12], strides = [1, 1]} : vector<8x256xf32> to vector<8x12xf32>
    %163 = vector.extract_strided_slice %155 {offsets = [0, 112], sizes = [8, 12], strides = [1, 1]} : vector<8x256xf32> to vector<8x12xf32>
    %164 = vector.extract_strided_slice %155 {offsets = [0, 128], sizes = [8, 12], strides = [1, 1]} : vector<8x256xf32> to vector<8x12xf32>
    %165 = vector.extract_strided_slice %155 {offsets = [0, 144], sizes = [8, 12], strides = [1, 1]} : vector<8x256xf32> to vector<8x12xf32>
    %166 = vector.extract_strided_slice %155 {offsets = [0, 160], sizes = [8, 12], strides = [1, 1]} : vector<8x256xf32> to vector<8x12xf32>
    %167 = vector.extract_strided_slice %155 {offsets = [0, 176], sizes = [8, 12], strides = [1, 1]} : vector<8x256xf32> to vector<8x12xf32>
    %168 = tpu.concatenate %156, %157, %158, %159, %160, %161, %162, %163, %164, %165, %166, %167 in 1 : vector<8x12xf32>, vector<8x12xf32>, vector<8x12xf32>, vector<8x12xf32>, vector<8x12xf32>, vector<8x12xf32>, vector<8x12xf32>, vector<8x12xf32>, vector<8x12xf32>, vector<8x12xf32>, vector<8x12xf32>, vector<8x12xf32> -> vector<8x144xf32>
    %c1_57 = arith.constant 1 : index
    %c0_58 = arith.constant 0 : index
    %c0_59 = arith.constant 0 : index
    %169 = vector.load %arg2[%c1_57, %c0_58, %c0_59] : memref<2x8x144xf32, #tpu.memory_space<vmem>>, vector<1x8x144xf32>
    %170 = vector.shape_cast %169 : vector<1x8x144xf32> to vector<8x144xf32>
    %171 = vector.shape_cast %168 : vector<8x144xf32> to vector<1x8x144xf32>
    tpu.vector_store %arg2[%c1_57, %c0_58, %c0_59], %171 {strides = array<i32>} : memref<2x8x144xf32, #tpu.memory_space<vmem>>, vector<1x8x144xf32>,
    return
  }
}

</mosaic_0001>

<bundles_post_ra>
// kernel: convnet_forward.1
= control target key start
LH: loop header
LB: loop body
LE: loop exit
PB: predicated region body
PF: predicated region fallthrough
CT: control target
= control target key end

     0   :  { %v1908_v3 = vmov 0.0   ;;  %s1909_s13 = smov 127   ;;  %s1910_s14 = smov 111   ;;  %v1912_v5 = vmov 32   ;;  %vm19_vm0 = vcmask 1039360   ;;  %vm39_vm1 = vcmask 908288   ;;  %s2323_s0 = inlined_call_operand.vmem [shape: f32[2,8,256], index: 0, kind: input, shape index: {}]   ;;  %s2324_s1 = inlined_call_operand.vmem [shape: f32[4,32,129], index: 1, kind: input, shape index: {}]   ;;  %s2325_s2 = inlined_call_operand.vmem [shape: f32[2,8,144], index: 2, kind: output, shape index: {}]  }
   0x1   :  { %v11_v0 = vld [vmem:[%s2323_s0] sm:$0xff]  ;;  %v12_v1 = vld [vmem:[%s2323_s0 + $0x8] sm:$0xff]  ;;  %126 = vmatprep.mubr.f32.mxu0 %v1908_v3  ;;  %295 = vmatprep.mubr.f32.mxu1 %v1908_v3  ;;  %s1911_s15 = smov 112   ;;  %v1962_v6 = vld [vmem:[%s2324_s1 + $0x10] sm:$0xff]  ;;  %vm29_vm2 = vcmask 916480   ;;  %vm57_vm3 = vcmask 261120  }
   0x2   :  { %v1624_v2 = vpack.i.bf16 %v12_v1, %v11_v0  ;;  %v1954_v4 = vld [vmem:[%s2324_s1] sm:$0xff]  ;;  %1639 = vset.pattern.permute.xlu1 %v1912_v5  ;;  %1640 = vset.pattern.permute.xlu0 %v1912_v5  ;;  %v1991_v41 = vld [vmem:[%s2324_s1 + $0x50] sm:$0xff]  ;;  %v1913_v42 = vmov 64   ;;  %vm222_vm4 = vcmask 523264   ;;  %s1918_s16 = smov 116   ;;  %s1919_s17 = smov 108  }
   0x3   :  { %v1986_v40 = vld [vmem:[%s2324_s1 + $0x40] sm:$0xff]  ;;  %v2005_v44 = vld [vmem:[%s2324_s1 + $0x70] sm:$0xff]  ;;  %s1920_s18 = smov 104   ;;  %s1921_s19 = smov 100   ;;  %vm701_vm5 = vcmask 97280   ;;  %vm703_vm6 = vcmask 195584  }
   0x4   :  { %1625 = vrot.lane.b32.xlu0 %v1624_v2, %s1909_s13  ;;  %1635 = vrot.lane.b32.xlu1 %v1624_v2, %s1910_s14  ;;  %v2000_v43 = vld [vmem:[%s2324_s1 + $0x60] sm:$0xff]  ;;  %s1922_s20 = smov 96   ;;  %s1923_s21 = smov 92   ;;  %vm705_vm7 = vcmask 293888   ;;  %vm707_vm8 = vcmask 392192   ;;  %vm709_vm9 = vcmask 490496  }
   0x5   :  { %s1924_s22 = smov 88   ;;  %vm711_vm10 = vcmask 588800   ;;  %vm713_vm11 = vcmask 687104   ;;  %vm715_vm12 = vcmask 785408   ;;  %vm717_vm13 = vcmask 883712  }
   0x6   :  { %vm719_vm14 = vcmask 982016   ;;  %vm721_vm15 = vcmask 31744  }
   0x8   :  { %1630 = vrot.lane.b32.xlu0 %v1624_v2, %s1911_s15  ;;  %49 = vperm.xlu1 %1639, %v1954_v4  }
   0xc   :  { %54 = vperm.xlu0 %1640, %v1962_v6   ;;  %1672 = vset.pattern.permute.xlu1 %v1913_v42 }
  0x10   :  { %1671 = vset.pattern.permute.xlu0 %v1913_v42 }
  0x76   :  { %v1626_v7 = vpop.permute.xlu0 %1625  ;;  %v1636_v8 = vpop.permute.xlu1 %1635 }
  0x77   :  { %v1628_v9 = vunpack.i.h.bf16 %v1626_v7  ;;  %v1627_v10 = vunpack.i.l.bf16 %v1626_v7  ;;  %v1638_v11 = vunpack.i.h.bf16 %v1636_v8  ;;  %v1637_v12 = vunpack.i.l.bf16 %v1636_v8 }
  0x79   :  { %v24_v13 = vsel %vm19_vm0, %v1628_v9, %v1627_v10  ;;  %v20_v14 = vsel %vm19_vm0, %v1627_v10, %v1628_v9  ;;  %v44_v20 = vsel %vm39_vm1, %v1638_v11, %v1637_v12  ;;  %v40_v21 = vsel %vm39_vm1, %v1637_v12, %v1638_v11 }
  0x7a   :  { %v1631_v15 = vpop.permute.xlu0 %1630  ;;  %v1463_v16 = vpack.c.bf16 %v24_v13, %v12_v1  ;;  %v1465_v17 = vpack.c.bf16 %v20_v14, %v11_v0 }
  0x7b   :  { %v1633_v18 = vunpack.i.h.bf16 %v1631_v15  ;;  %v1632_v19 = vunpack.i.l.bf16 %v1631_v15 }
  0x7c   :  { %1464 = vmatprep.subr.bf16.mxu0 %v1463_v16 }
  0x7d   :  { %1466 = vmatpush1.bf16.msra.mxu0 %v1465_v17  ;;  %v34_v22 = vsel %vm29_vm2, %v1633_v18, %v1632_v19  ;;  %v30_v23 = vsel %vm29_vm2, %v1632_v19, %v1633_v18 }
  0x7e   :  { %v1467_v24 = vpack.c.bf16 %v44_v20, %v34_v22  ;;  %v1469_v25 = vpack.c.bf16 %v40_v21, %v30_v23 }
  0x80   :  { %1468 = vmatprep.subr.bf16.mxu0 %v1467_v24 }
  0x81   :  { %1470 = vmatpush1.bf16.msra.mxu0 %v1469_v25 }
  0x84   :  { %1427 = vmatmul.mubr.msk.f32.vlgmr.msra.gmra.mrb[0].mxu0 %vm57_vm3, %v1954_v4 }
  0x85   :  { %132 = vmatprep.mubr.f32.mxu0 %v1908_v3 }
  0x87   :  { %v50_v26 = vpop.permute.xlu1 %49 }
  0x88   :  { %1428 = vmatmul.mubr.msk.f32.gmra.mrb[2].mxu0 %vm57_vm3, %v1962_v6 }
  0x89   :  { %515 = vmatprep.mubr.f32.mxu0 %v1908_v3 }
  0x8b   :  { %v55_v31 = vpop.permute.xlu0 %54 }
 0x157   :  { %v128_v27 = vpop.f32.mrb[0].mxu0 }
 0x158   :  { %v129_v28 = vadd.f32 %v128_v27, %v50_v26  ;;  %v130_v29 = vpop.f32.mrb[1].mxu0 }
 0x159   :  { %v131_v30 = vadd.f32 %v130_v29, %v50_v26 }
 0x15b   :  { %v134_v32 = vpop.f32.mrb[2].mxu0  ;;  %v1646_v33 = vpack.i.bf16 %v131_v30, %v129_v28 }
 0x15c   :  { %v135_v34 = vadd.f32 %v134_v32, %v55_v31  ;;  %v136_v35 = vpop.f32.mrb[3].mxu0 }
 0x15d   :  { %v137_v36 = vadd.f32 %v136_v35, %v55_v31  ;;  %1647 = vrot.lane.b32.xlu0 %v1646_v33, %s1911_s15  ;;  %1642 = vrot.lane.b32.xlu1 %v1646_v33, %s1909_s13 }
 0x15e   :  { %v1473_v37 = vpack.c.bf16 %v135_v34, %v129_v28 }
 0x15f   :  { %v1471_v38 = vpack.c.bf16 %v137_v36, %v131_v30  ;;  %v1656_v39 = vpack.i.bf16 %v137_v36, %v135_v34 }
 0x161   :  { %1472 = vmatprep.subr.bf16.mxu1 %v1471_v38  ;;  %1652 = vrot.lane.b32.xlu0 %v1646_v33, %s1910_s14 }
 0x162   :  { %1657 = vrot.lane.b32.xlu1 %v1656_v39, %s1909_s13  ;;  %1474 = vmatpush1.bf16.msra.mxu1 %v1473_v37 }
 0x165   :  { %204 = vperm.xlu0 %1671, %v1986_v40  }
 0x166   :  { %1662 = vrot.lane.b32.xlu1 %v1656_v39, %s1911_s15 }
 0x169   :  { %219 = vperm.xlu0 %1671, %v2005_v44  }
 0x16a   :  { %1667 = vrot.lane.b32.xlu1 %v1656_v39, %s1910_s14 }
 0x16e   :  { %209 = vperm.xlu1 %1672, %v1991_v41  }
 0x172   :  { %214 = vperm.xlu1 %1672, %v2000_v43  }
 0x1cf   :  { %v1643_v45 = vpop.permute.xlu1 %1642  ;;  %v1648_v46 = vpop.permute.xlu0 %1647 }
 0x1d0   :  { %v1645_v47 = vunpack.i.h.bf16 %v1643_v45  ;;  %v1644_v48 = vunpack.i.l.bf16 %v1643_v45  ;;  %v1650_v52 = vunpack.i.h.bf16 %v1648_v46  ;;  %v1649_v53 = vunpack.i.l.bf16 %v1648_v46 }
 0x1d2   :  { %v159_v54 = vsel %vm19_vm0, %v1645_v47, %v1644_v48  ;;  %v151_v56 = vsel %vm19_vm0, %v1644_v48, %v1645_v47  ;;  %v177_v0 = vsel %vm29_vm2, %v1650_v52, %v1649_v53  ;;  %v169_v1 = vsel %vm29_vm2, %v1649_v53, %v1650_v52 }
 0x1d3   :  { %v1653_v58 = vpop.permute.xlu0 %1652 }
 0x1d4   :  { %v1658_v49 = vpop.permute.xlu1 %1657  ;;  %v1655_v2 = vunpack.i.h.bf16 %v1653_v58  ;;  %v1654_v7 = vunpack.i.l.bf16 %v1653_v58 }
 0x1d5   :  { %v1660_v50 = vunpack.i.h.bf16 %v1658_v49  ;;  %v1659_v51 = vunpack.i.l.bf16 %v1658_v49 }
 0x1d6   :  { %v195_v15 = vsel %vm39_vm1, %v1655_v2, %v1654_v7  ;;  %v187_v17 = vsel %vm39_vm1, %v1654_v7, %v1655_v2 }
 0x1d7   :  { %v160_v55 = vsel %vm19_vm0, %v1660_v50, %v1659_v51  ;;  %v152_v57 = vsel %vm19_vm0, %v1659_v51, %v1660_v50 }
 0x1d8   :  { %v1663_v59 = vpop.permute.xlu1 %1662  ;;  %v1475_v60 = vpack.c.bf16 %v160_v55, %v159_v54  ;;  %v1477_v61 = vpack.c.bf16 %v152_v57, %v151_v56  ;;  %v2048_v54 = vld [vmem:[%s2324_s1 + $0x88] sm:$0xff]  ;;  %v1914_v55 = vmov 0   ;;  %v2055_v56 = vld [vmem:[%s2324_s1 + $0x98] sm:$0xff] }
 0x1d9   :  { %v1665_v62 = vunpack.i.h.bf16 %v1663_v59  ;;  %v1664_v63 = vunpack.i.l.bf16 %v1663_v59  ;;  %1733 = vset.pattern.permute.xlu1 %v1914_v55  ;;  %1734 = vset.pattern.permute.xlu0 %v1914_v55 }
 0x1da   :  { %1476 = vmatprep.subr.bf16.mxu1 %v1475_v60 }
 0x1db   :  { %1478 = vmatpush1.bf16.msra.mxu1 %v1477_v61  ;;  %v178_v8 = vsel %vm29_vm2, %v1665_v62, %v1664_v63  ;;  %v170_v9 = vsel %vm29_vm2, %v1664_v63, %v1665_v62 }
 0x1dc   :  { %v1668_v10 = vpop.permute.xlu1 %1667  ;;  %v1479_v11 = vpack.c.bf16 %v178_v8, %v177_v0  ;;  %v1481_v12 = vpack.c.bf16 %v170_v9, %v169_v1 }
 0x1dd   :  { %v1670_v13 = vunpack.i.h.bf16 %v1668_v10  ;;  %v1669_v14 = vunpack.i.l.bf16 %v1668_v10 }
 0x1de   :  { %1480 = vmatprep.subr.bf16.mxu1 %v1479_v11 }
 0x1df   :  { %1482 = vmatpush1.bf16.msra.mxu1 %v1481_v12  ;;  %v196_v16 = vsel %vm39_vm1, %v1670_v13, %v1669_v14  ;;  %v188_v18 = vsel %vm39_vm1, %v1669_v14, %v1670_v13 }
 0x1e0   :  { %v1483_v19 = vpack.c.bf16 %v196_v16, %v195_v15  ;;  %v1485_v20 = vpack.c.bf16 %v188_v18, %v187_v17 }
 0x1e2   :  { %1484 = vmatprep.subr.bf16.mxu1 %v1483_v19 }
 0x1e3   :  { %1486 = vmatpush1.bf16.msra.mxu1 %v1485_v20 }
 0x1e4   :  { %v205_v21 = vpop.permute.xlu0 %204 }
 0x1e6   :  { %1433 = vmatmul.mubr.msk.f32.vlgmr.msra.gmra.mrb[0].mxu1 %vm222_vm4, %v1986_v40 }
 0x1e7   :  { %301 = vmatprep.mubr.f32.mxu1 %v1908_v3 }
 0x1e8   :  { %v220_v45 = vpop.permute.xlu0 %219 }
 0x1ea   :  { %1434 = vmatmul.mubr.msk.f32.gmra.mrb[2].mxu1 %vm222_vm4, %v1991_v41 }
 0x1eb   :  { %307 = vmatprep.mubr.f32.mxu1 %v1908_v3 }
 0x1ed   :  { %v210_v23 = vpop.permute.xlu1 %209 }
 0x1ee   :  { %1435 = vmatmul.mubr.msk.f32.gmra.mrb[4].mxu1 %vm222_vm4, %v2000_v43 }
 0x1ef   :  { %313 = vmatprep.mubr.f32.mxu1 %v1908_v3 }
 0x1f1   :  { %v215_v32 = vpop.permute.xlu1 %214 }
 0x1f2   :  { %1436 = vmatmul.mubr.msk.f32.gmra.mrb[6].mxu1 %vm222_vm4, %v2005_v44 }
 0x1f3   :  { %659 = vmatprep.mubr.f32.mxu1 %v1908_v3 }
 0x2b9   :  { %v297_v22 = vpop.f32.mrb[0].mxu1 }
 0x2ba   :  { %v298_v24 = vadd.f32 %v297_v22, %v205_v21  ;;  %v299_v25 = vpop.f32.mrb[1].mxu1 }
 0x2bb   :  { %v300_v26 = vadd.f32 %v299_v25, %v205_v21 }
 0x2bd   :  { %v303_v27 = vpop.f32.mrb[2].mxu1  ;;  %v1673_v28 = vpack.i.bf16 %v300_v26, %v298_v24 }
 0x2be   :  { %v304_v29 = vadd.f32 %v303_v27, %v210_v23  ;;  %v305_v30 = vpop.f32.mrb[3].mxu1 }
 0x2bf   :  { %v306_v31 = vadd.f32 %v305_v30, %v210_v23  ;;  %1674 = vrot.lane.b32.xlu1 %v1673_v28, %s1909_s13 }
 0x2c0   :  { %v1489_v33 = vpack.c.bf16 %v304_v29, %v298_v24 }
 0x2c1   :  { %v309_v34 = vpop.f32.mrb[4].mxu1  ;;  %v1678_v35 = vpack.i.bf16 %v306_v31, %v304_v29  ;;  %v1487_v36 = vpack.c.bf16 %v306_v31, %v300_v26 }
 0x2c2   :  { %v310_v37 = vadd.f32 %v309_v34, %v215_v32  ;;  %v311_v38 = vpop.f32.mrb[5].mxu1 }
 0x2c3   :  { %v312_v39 = vadd.f32 %v311_v38, %v215_v32  ;;  %1679 = vrot.lane.b32.xlu0 %v1678_v35, %s1909_s13  ;;  %1488 = vmatprep.subr.bf16.mxu0 %v1487_v36 }
 0x2c4   :  { %1490 = vmatpush1.bf16.msra.mxu0 %v1489_v33 }
 0x2c5   :  { %v315_v46 = vpop.f32.mrb[6].mxu1  ;;  %v1683_v47 = vpack.i.bf16 %v312_v39, %v310_v37 }
 0x2c6   :  { %v316_v48 = vadd.f32 %v315_v46, %v220_v45  ;;  %v317_v49 = vpop.f32.mrb[7].mxu1 }
 0x2c7   :  { %v318_v50 = vadd.f32 %v317_v49, %v220_v45  ;;  %1684 = vrot.lane.b32.xlu1 %v1683_v47, %s1909_s13 }
 0x2c8   :  { %v1493_v51 = vpack.c.bf16 %v316_v48, %v310_v37 }
 0x2c9   :  { %v1693_v52 = vpack.i.bf16 %v318_v50, %v316_v48  ;;  %v1491_v53 = vpack.c.bf16 %v318_v50, %v312_v39 }
 0x2cb   :  { %1694 = vrot.lane.b32.xlu0 %v1693_v52, %s1909_s13  ;;  %1689 = vrot.lane.b32.xlu1 %v1673_v28, %s1911_s15 }
 0x2cc   :  { %1492 = vmatprep.subr.bf16.mxu0 %v1491_v53 }
 0x2cd   :  { %1494 = vmatpush1.bf16.msra.mxu0 %v1493_v51 }
 0x2cf   :  { %1699 = vrot.lane.b32.xlu0 %v1678_v35, %s1911_s15  ;;  %1704 = vrot.lane.b32.xlu1 %v1683_v47, %s1911_s15 }
 0x2d3   :  { %1714 = vrot.lane.b32.xlu0 %v1693_v52, %s1911_s15  ;;  %1709 = vrot.lane.b32.xlu1 %v1673_v28, %s1910_s14 }
 0x2d7   :  { %1719 = vrot.lane.b32.xlu0 %v1678_v35, %s1910_s14  ;;  %1724 = vrot.lane.b32.xlu1 %v1683_v47, %s1910_s14 }
 0x2db   :  { %1729 = vrot.lane.b32.xlu0 %v1693_v52, %s1910_s14  ;;  %443 = vperm.xlu1 %1733, %v2048_v54  }
 0x2df   :  { %448 = vperm.xlu0 %1734, %v2055_v56   ;;  %1780 = vset.pattern.permute.xlu1 %v1912_v5 }
 0x2e3   :  { %1781 = vset.pattern.permute.xlu0 %v1912_v5 }
 0x331   :  { %v1675_v57 = vpop.permute.xlu1 %1674 }
 0x332   :  { %v1677_v58 = vunpack.i.h.bf16 %v1675_v57  ;;  %v1676_v59 = vunpack.i.l.bf16 %v1675_v57 }
 0x334   :  { %v344_v63 = vsel %vm19_vm0, %v1676_v59, %v1677_v58  ;;  %v360_v1 = vsel %vm19_vm0, %v1677_v58, %v1676_v59 }
 0x335   :  { %v1680_v60 = vpop.permute.xlu0 %1679 }
 0x336   :  { %v1682_v61 = vunpack.i.h.bf16 %v1680_v60  ;;  %v1681_v62 = vunpack.i.l.bf16 %v1680_v60 }
 0x338   :  { %v345_v0 = vsel %vm19_vm0, %v1681_v62, %v1682_v61  ;;  %v361_v2 = vsel %vm19_vm0, %v1682_v61, %v1681_v62 }
 0x339   :  { %v1497_v7 = vpack.c.bf16 %v345_v0, %v344_v63  ;;  %v1685_v8 = vpop.permute.xlu1 %1684  ;;  %v1495_v9 = vpack.c.bf16 %v361_v2, %v360_v1 }
 0x33a   :  { %v1687_v10 = vunpack.i.h.bf16 %v1685_v8  ;;  %v1686_v5 = vunpack.i.l.bf16 %v1685_v8 }
 0x33b   :  { %1496 = vmatprep.subr.bf16.mxu0 %v1495_v9 }
 0x33c   :  { %1498 = vmatpush1.bf16.msra.mxu0 %v1497_v7  ;;  %v346_v17 = vsel %vm19_vm0, %v1686_v5, %v1687_v10  ;;  %v362_v19 = vsel %vm19_vm0, %v1687_v10, %v1686_v5 }
 0x33d   :  { %v1695_v11 = vpop.permute.xlu0 %1694  ;;  %v1690_v12 = vpop.permute.xlu1 %1689 }
 0x33e   :  { %v1697_v13 = vunpack.i.h.bf16 %v1695_v11  ;;  %v1696_v14 = vunpack.i.l.bf16 %v1695_v11  ;;  %v1692_v15 = vunpack.i.h.bf16 %v1690_v12  ;;  %v1691_v16 = vunpack.i.l.bf16 %v1690_v12 }
 0x340   :  { %v347_v18 = vsel %vm19_vm0, %v1696_v14, %v1697_v13  ;;  %v363_v20 = vsel %vm19_vm0, %v1697_v13, %v1696_v14  ;;  %v380_v27 = vsel %vm29_vm2, %v1691_v16, %v1692_v15  ;;  %v396_v28 = vsel %vm29_vm2, %v1692_v15, %v1691_v16  ;;  %v2088_v15 = vld [vmem:[%s2324_s1 + $0x80] sm:$0xff]  ;;  %v2095_v16 = vld [vmem:[%s2324_s1 + $0x90] sm:$0xff] }
 0x341   :  { %v1501_v21 = vpack.c.bf16 %v347_v18, %v346_v17  ;;  %v1700_v22 = vpop.permute.xlu0 %1699  ;;  %v1705_v23 = vpop.permute.xlu1 %1704  ;;  %v1499_v24 = vpack.c.bf16 %v363_v20, %v362_v19 }
 0x342   :  { %v1702_v25 = vunpack.i.h.bf16 %v1700_v22  ;;  %v1701_v26 = vunpack.i.l.bf16 %v1700_v22  ;;  %v1707_v30 = vunpack.i.h.bf16 %v1705_v23  ;;  %v1706_v31 = vunpack.i.l.bf16 %v1705_v23 }
 0x343   :  { %1500 = vmatprep.subr.bf16.mxu0 %v1499_v24 }
 0x344   :  { %v381_v29 = vsel %vm29_vm2, %v1701_v26, %v1702_v25  ;;  %1502 = vmatpush1.bf16.msra.mxu0 %v1501_v21  ;;  %v397_v32 = vsel %vm29_vm2, %v1702_v25, %v1701_v26  ;;  %v382_v46 = vsel %vm29_vm2, %v1706_v31, %v1707_v30  ;;  %v398_v48 = vsel %vm29_vm2, %v1707_v30, %v1706_v31  ;;  %v2109_v30 = vld [vmem:[%s2323_s0 + $0x18] sm:$0xff] }
 0x345   :  { %v1505_v33 = vpack.c.bf16 %v381_v29, %v380_v27  ;;  %v1715_v34 = vpop.permute.xlu0 %1714  ;;  %v1710_v35 = vpop.permute.xlu1 %1709  ;;  %v1503_v36 = vpack.c.bf16 %v397_v32, %v396_v28  ;;  %v2104_v29 = vld [vmem:[%s2323_s0 + $0x10] sm:$0xff] }
 0x346   :  { %v1717_v37 = vunpack.i.h.bf16 %v1715_v34  ;;  %v1716_v38 = vunpack.i.l.bf16 %v1715_v34  ;;  %v1712_v39 = vunpack.i.h.bf16 %v1710_v35  ;;  %v1711_v45 = vunpack.i.l.bf16 %v1710_v35 }
 0x347   :  { %1504 = vmatprep.subr.bf16.mxu0 %v1503_v36 }
 0x348   :  { %v383_v47 = vsel %vm29_vm2, %v1716_v38, %v1717_v37  ;;  %1506 = vmatpush1.bf16.msra.mxu0 %v1505_v33  ;;  %v399_v49 = vsel %vm29_vm2, %v1717_v37, %v1716_v38  ;;  %v416_v59 = vsel %vm39_vm1, %v1711_v45, %v1712_v39  ;;  %v432_v60 = vsel %vm39_vm1, %v1712_v39, %v1711_v45 }
 0x349   :  { %v1509_v50 = vpack.c.bf16 %v383_v47, %v382_v46  ;;  %v1720_v51 = vpop.permute.xlu0 %1719  ;;  %v1725_v52 = vpop.permute.xlu1 %1724  ;;  %v1507_v53 = vpack.c.bf16 %v399_v49, %v398_v48  ;;  %v1765_v33 = vpack.i.bf16 %v2109_v30, %v2104_v29 }
 0x34a   :  { %v1722_v57 = vunpack.i.h.bf16 %v1720_v51  ;;  %v1721_v58 = vunpack.i.l.bf16 %v1720_v51  ;;  %v1727_v62 = vunpack.i.h.bf16 %v1725_v52  ;;  %v1726_v63 = vunpack.i.l.bf16 %v1725_v52 }
 0x34b   :  { %1508 = vmatprep.subr.bf16.mxu0 %v1507_v53 }
 0x34c   :  { %v417_v61 = vsel %vm39_vm1, %v1721_v58, %v1722_v57  ;;  %1510 = vmatpush1.bf16.msra.mxu0 %v1509_v50  ;;  %v433_v0 = vsel %vm39_vm1, %v1722_v57, %v1721_v58  ;;  %v418_v10 = vsel %vm39_vm1, %v1726_v63, %v1727_v62  ;;  %v434_v11 = vsel %vm39_vm1, %v1727_v62, %v1726_v63 }
 0x34d   :  { %v1513_v1 = vpack.c.bf16 %v417_v61, %v416_v59  ;;  %v1730_v2 = vpop.permute.xlu0 %1729  ;;  %v1511_v7 = vpack.c.bf16 %v433_v0, %v432_v60 }
 0x34e   :  { %v1732_v8 = vunpack.i.h.bf16 %v1730_v2  ;;  %v1731_v9 = vunpack.i.l.bf16 %v1730_v2 }
 0x34f   :  { %1512 = vmatprep.subr.bf16.mxu0 %v1511_v7 }
 0x350   :  { %v419_v5 = vsel %vm39_vm1, %v1731_v9, %v1732_v8  ;;  %1514 = vmatpush1.bf16.msra.mxu0 %v1513_v1  ;;  %v435_v12 = vsel %vm39_vm1, %v1732_v8, %v1731_v9 }
 0x351   :  { %v1517_v13 = vpack.c.bf16 %v419_v5, %v418_v10  ;;  %v1515_v14 = vpack.c.bf16 %v435_v12, %v434_v11 }
 0x353   :  { %1516 = vmatprep.subr.bf16.mxu0 %v1515_v14 }
 0x354   :  { %1518 = vmatpush1.bf16.msra.mxu0 %v1517_v13 }
 0x357   :  { %516 = vmatmul.mubr.f32.vlgmr.msra.gmra.mrb[4].mxu0 %v2088_v15 }
 0x358   :  { %521 = vmatprep.mubr.f32.mxu0 %v1908_v3 }
 0x35a   :  { %v444_v17 = vpop.permute.xlu1 %443 }
 0x35b   :  { %522 = vmatmul.mubr.f32.gmra.mrb[6].mxu0 %v2095_v16 }
 0x35c   :  { %1005 = vmatprep.mubr.f32.mxu0 %v1908_v3 }
 0x35e   :  { %v449_v22 = vpop.permute.xlu0 %448 }
 0x42a   :  { %v517_v18 = vpop.f32.mrb[4].mxu0 }
 0x42b   :  { %v518_v19 = vadd.f32 %v517_v18, %v444_v17  ;;  %v519_v20 = vpop.f32.mrb[5].mxu0 }
 0x42c   :  { %v520_v21 = vadd.f32 %v519_v20, %v444_v17 }
 0x42e   :  { %v523_v23 = vpop.f32.mrb[6].mxu0  ;;  %v1740_v24 = vpack.i.bf16 %v520_v21, %v518_v19 }
 0x42f   :  { %v524_v25 = vadd.f32 %v523_v23, %v449_v22  ;;  %v525_v26 = vpop.f32.mrb[7].mxu0 }
 0x430   :  { %v526_v27 = vadd.f32 %v525_v26, %v449_v22  ;;  %1741 = vrot.lane.b32.xlu0 %v1740_v24, %s1911_s15  ;;  %1736 = vrot.lane.b32.xlu1 %v1740_v24, %s1909_s13 }
 0x431   :  { %v1521_v28 = vpack.c.bf16 %v524_v25, %v518_v19 }
 0x432   :  { %v1519_v31 = vpack.c.bf16 %v526_v27, %v520_v21  ;;  %v1750_v32 = vpack.i.bf16 %v526_v27, %v524_v25 }
 0x434   :  { %1520 = vmatprep.subr.bf16.mxu1 %v1519_v31  ;;  %1746 = vrot.lane.b32.xlu0 %v1740_v24, %s1910_s14 }
 0x435   :  { %1751 = vrot.lane.b32.xlu1 %v1750_v32, %s1909_s13  ;;  %1522 = vmatpush1.bf16.msra.mxu1 %v1521_v28 }
 0x438   :  { %1766 = vrot.lane.b32.xlu0 %v1765_v33, %s1909_s13 }
 0x439   :  { %1756 = vrot.lane.b32.xlu1 %v1750_v32, %s1911_s15 }
 0x43c   :  { %1776 = vrot.lane.b32.xlu0 %v1765_v33, %s1910_s14 }
 0x43d   :  { %1761 = vrot.lane.b32.xlu1 %v1750_v32, %s1910_s14 }
 0x440   :  { %767 = vperm.xlu0 %1781, %v1962_v6  }
 0x441   :  { %1771 = vrot.lane.b32.xlu1 %v1765_v33, %s1911_s15 }
 0x444   :  { %1812 = vset.pattern.permute.xlu0 %v1913_v42 }
 0x445   :  { %762 = vperm.xlu1 %1780, %v1954_v4  }
 0x449   :  { %1813 = vset.pattern.permute.xlu1 %v1913_v42 }
 0x4a2   :  { %v1742_v34 = vpop.permute.xlu0 %1741  ;;  %v1737_v35 = vpop.permute.xlu1 %1736 }
 0x4a3   :  { %v1739_v36 = vunpack.i.h.bf16 %v1737_v35  ;;  %v1738_v37 = vunpack.i.l.bf16 %v1737_v35  ;;  %v1744_v47 = vunpack.i.h.bf16 %v1742_v34  ;;  %v1743_v48 = vunpack.i.l.bf16 %v1742_v34  ;;  %v2144_v35 = vld [vmem:[%s2324_s1 + $0xc0] sm:$0xff]  ;;  %s1915_s1 = smov 84  }
 0x4a5   :  { %v540_v49 = vsel %vm19_vm0, %v1738_v37, %v1739_v36  ;;  %v548_v51 = vsel %vm19_vm0, %v1739_v36, %v1738_v37  ;;  %v558_v0 = vsel %vm29_vm2, %v1743_v48, %v1744_v47  ;;  %v566_v1 = vsel %vm29_vm2, %v1744_v47, %v1743_v48 }
 0x4a6   :  { %v1747_v38 = vpop.permute.xlu0 %1746 }
 0x4a7   :  { %v1752_v39 = vpop.permute.xlu1 %1751  ;;  %v1749_v2 = vunpack.i.h.bf16 %v1747_v38  ;;  %v1748_v7 = vunpack.i.l.bf16 %v1747_v38 }
 0x4a8   :  { %v1754_v45 = vunpack.i.h.bf16 %v1752_v39  ;;  %v1753_v46 = vunpack.i.l.bf16 %v1752_v39 }
 0x4a9   :  { %v576_v20 = vsel %vm39_vm1, %v1748_v7, %v1749_v2  ;;  %v584_v22 = vsel %vm39_vm1, %v1749_v2, %v1748_v7 }
 0x4aa   :  { %v541_v50 = vsel %vm19_vm0, %v1753_v46, %v1754_v45  ;;  %v549_v52 = vsel %vm19_vm0, %v1754_v45, %v1753_v46  ;;  %v1767_v53 = vpop.permute.xlu0 %1766 }
 0x4ab   :  { %v1525_v57 = vpack.c.bf16 %v541_v50, %v540_v49  ;;  %v1757_v58 = vpop.permute.xlu1 %1756  ;;  %v1523_v59 = vpack.c.bf16 %v549_v52, %v548_v51  ;;  %v1769_v60 = vunpack.i.h.bf16 %v1767_v53  ;;  %v1768_v61 = vunpack.i.l.bf16 %v1767_v53 }
 0x4ac   :  { %v1759_v62 = vunpack.i.h.bf16 %v1757_v58  ;;  %v1758_v63 = vunpack.i.l.bf16 %v1757_v58 }
 0x4ad   :  { %1524 = vmatprep.subr.bf16.mxu1 %v1523_v59  ;;  %v739_v13 = vsel %vm19_vm0, %v1769_v60, %v1768_v61  ;;  %v735_v25 = vsel %vm19_vm0, %v1768_v61, %v1769_v60 }
 0x4ae   :  { %v559_v8 = vsel %vm29_vm2, %v1758_v63, %v1759_v62  ;;  %1526 = vmatpush1.bf16.msra.mxu1 %v1525_v57  ;;  %v567_v9 = vsel %vm29_vm2, %v1759_v62, %v1758_v63  ;;  %v1777_v10 = vpop.permute.xlu0 %1776  ;;  %v1535_v28 = vpack.c.bf16 %v739_v13, %v2109_v30  ;;  %v1537_v34 = vpack.c.bf16 %v735_v25, %v2104_v29 }
 0x4af   :  { %v1529_v5 = vpack.c.bf16 %v559_v8, %v558_v0  ;;  %v1762_v11 = vpop.permute.xlu1 %1761  ;;  %v1527_v12 = vpack.c.bf16 %v567_v9, %v566_v1  ;;  %v1779_v18 = vunpack.i.h.bf16 %v1777_v10  ;;  %v1778_v19 = vunpack.i.l.bf16 %v1777_v10 }
 0x4b0   :  { %v1764_v14 = vunpack.i.h.bf16 %v1762_v11  ;;  %v1763_v17 = vunpack.i.l.bf16 %v1762_v11 }
 0x4b1   :  { %1528 = vmatprep.subr.bf16.mxu1 %v1527_v12  ;;  %v757_v33 = vsel %vm39_vm1, %v1779_v18, %v1778_v19  ;;  %v753_v37 = vsel %vm39_vm1, %v1778_v19, %v1779_v18 }
 0x4b2   :  { %v577_v21 = vsel %vm39_vm1, %v1763_v17, %v1764_v14  ;;  %1530 = vmatpush1.bf16.msra.mxu1 %v1529_v5  ;;  %v585_v23 = vsel %vm39_vm1, %v1764_v14, %v1763_v17 }
 0x4b3   :  { %v1533_v24 = vpack.c.bf16 %v577_v21, %v576_v20  ;;  %v1531_v26 = vpack.c.bf16 %v585_v23, %v584_v22  ;;  %v1772_v27 = vpop.permute.xlu1 %1771 }
 0x4b4   :  { %v1774_v31 = vunpack.i.h.bf16 %v1772_v27  ;;  %v1773_v32 = vunpack.i.l.bf16 %v1772_v27 }
 0x4b5   :  { %1532 = vmatprep.subr.bf16.mxu1 %v1531_v26 }
 0x4b6   :  { %1534 = vmatpush1.bf16.msra.mxu1 %v1533_v24  ;;  %v748_v36 = vsel %vm29_vm2, %v1774_v31, %v1773_v32  ;;  %v744_v38 = vsel %vm29_vm2, %v1773_v32, %v1774_v31 }
 0x4b7   :  { %1536 = vmatprep.subr.bf16.mxu1 %v1535_v28  ;;  %v1539_v30 = vpack.c.bf16 %v757_v33, %v748_v36  ;;  %v1541_v39 = vpack.c.bf16 %v753_v37, %v744_v38 }
 0x4b9   :  { %1442 = vmatmul.mubr.msk.f32.vlgmr.msra.gmra.mrb[8].mxu1 %vm222_vm4, %v2144_v35 }
 0x4ba   :  { %1538 = vmatpush1.bf16.msra.mxu1 %v1537_v34  ;;  %838 = vmatprep.mubr.f32.mxu1 %v1908_v3 }
 0x4bb   :  { %1540 = vmatprep.subr.bf16.mxu1 %v1539_v30 }
 0x4be   :  { %1542 = vmatpush1.bf16.msra.mxu1 %v1541_v39 }
 0x4bf   :  { %v768_v51 = vpop.permute.xlu0 %767 }
 0x4c1   :  { %1445 = vmatmul.mubr.msk.f32.vlgmr.msra.gmra.mrb[10].mxu1 %vm57_vm3, %v1954_v4 }
 0x4c2   :  { %844 = vmatprep.mubr.f32.mxu1 %v1908_v3 }
 0x4c4   :  { %v763_v46 = vpop.permute.xlu1 %762 }
 0x4c5   :  { %1446 = vmatmul.mubr.msk.f32.gmra.mrb[12].mxu1 %vm57_vm3, %v1962_v6 }
 0x4c6   :  { %1224 = vmatprep.mubr.f32.mxu1 %v1908_v3 }
 0x58c   :  { %v2158_v29 = vpop.f32.mrb[8].mxu1 }
 0x58d   :  { %v2160_v45 = vpop.f32.mrb[9].mxu1 }
 0x594   :  { %v840_v47 = vpop.f32.mrb[10].mxu1 }
 0x595   :  { %v841_v48 = vadd.f32 %v840_v47, %v763_v46  ;;  %v842_v49 = vpop.f32.mrb[11].mxu1 }
 0x596   :  { %v843_v50 = vadd.f32 %v842_v49, %v763_v46 }
 0x598   :  { %v846_v52 = vpop.f32.mrb[12].mxu1  ;;  %v1787_v53 = vpack.i.bf16 %v843_v50, %v841_v48 }
 0x599   :  { %v847_v4 = vadd.f32 %v846_v52, %v768_v51  ;;  %v848_v57 = vpop.f32.mrb[13].mxu1 }
 0x59a   :  { %v849_v58 = vadd.f32 %v848_v57, %v768_v51  ;;  %1788 = vrot.lane.b32.xlu0 %v1787_v53, %s1911_s15  ;;  %1783 = vrot.lane.b32.xlu1 %v1787_v53, %s1909_s13 }
 0x59b   :  { %v1545_v6 = vpack.c.bf16 %v847_v4, %v841_v48 }
 0x59c   :  { %v1543_v59 = vpack.c.bf16 %v849_v58, %v843_v50  ;;  %v1797_v60 = vpack.i.bf16 %v849_v58, %v847_v4 }
 0x59e   :  { %1544 = vmatprep.subr.bf16.mxu0 %v1543_v59  ;;  %1793 = vrot.lane.b32.xlu0 %v1787_v53, %s1910_s14 }
 0x59f   :  { %1798 = vrot.lane.b32.xlu1 %v1797_v60, %s1909_s13  ;;  %1546 = vmatpush1.bf16.msra.mxu0 %v1545_v6 }
 0x5a2   :  { %915 = vperm.xlu0 %1812, %v1986_v40  }
 0x5a3   :  { %1803 = vrot.lane.b32.xlu1 %v1797_v60, %s1911_s15 }
 0x5a6   :  { %930 = vperm.xlu0 %1812, %v2005_v44  }
 0x5a7   :  { %1808 = vrot.lane.b32.xlu1 %v1797_v60, %s1910_s14 }
 0x5aa   :  { %1875 = vset.pattern.permute.xlu0 %v1914_v55 }
 0x5ab   :  { %920 = vperm.xlu1 %1813, %v1991_v41  }
 0x5af   :  { %925 = vperm.xlu1 %1813, %v2000_v43  }
 0x5b3   :  { %1874 = vset.pattern.permute.xlu1 %v1914_v55 }
 0x60c   :  { %v1784_v61 = vpop.permute.xlu1 %1783  ;;  %v1789_v62 = vpop.permute.xlu0 %1788 }
 0x60d   :  { %v1786_v63 = vunpack.i.h.bf16 %v1784_v61  ;;  %v1785_v0 = vunpack.i.l.bf16 %v1784_v61  ;;  %v1791_v8 = vunpack.i.h.bf16 %v1789_v62  ;;  %v1790_v9 = vunpack.i.l.bf16 %v1789_v62 }
 0x60f   :  { %v863_v10 = vsel %vm19_vm0, %v1785_v0, %v1786_v63  ;;  %v871_v11 = vsel %vm19_vm0, %v1786_v63, %v1785_v0  ;;  %v881_v20 = vsel %vm29_vm2, %v1790_v9, %v1791_v8  ;;  %v889_v21 = vsel %vm29_vm2, %v1791_v8, %v1790_v9 }
 0x610   :  { %v1794_v13 = vpop.permute.xlu0 %1793 }
 0x611   :  { %v1799_v1 = vpop.permute.xlu1 %1798  ;;  %v1796_v22 = vunpack.i.h.bf16 %v1794_v13  ;;  %v1795_v23 = vunpack.i.l.bf16 %v1794_v13 }
 0x612   :  { %v1801_v2 = vunpack.i.h.bf16 %v1799_v1  ;;  %v1800_v7 = vunpack.i.l.bf16 %v1799_v1 }
 0x613   :  { %v899_v33 = vsel %vm39_vm1, %v1795_v23, %v1796_v22  ;;  %v907_v36 = vsel %vm39_vm1, %v1796_v22, %v1795_v23 }
 0x614   :  { %v864_v5 = vsel %vm19_vm0, %v1800_v7, %v1801_v2  ;;  %v872_v12 = vsel %vm19_vm0, %v1801_v2, %v1800_v7 }
 0x615   :  { %v1549_v14 = vpack.c.bf16 %v864_v5, %v863_v10  ;;  %v1804_v55 = vpop.permute.xlu1 %1803  ;;  %v1547_v17 = vpack.c.bf16 %v872_v12, %v871_v11 }
 0x616   :  { %v1806_v18 = vunpack.i.h.bf16 %v1804_v55  ;;  %v1805_v19 = vunpack.i.l.bf16 %v1804_v55 }
 0x617   :  { %1548 = vmatprep.subr.bf16.mxu0 %v1547_v17 }
 0x618   :  { %v882_v24 = vsel %vm29_vm2, %v1805_v19, %v1806_v18  ;;  %1550 = vmatpush1.bf16.msra.mxu0 %v1549_v14  ;;  %v890_v25 = vsel %vm29_vm2, %v1806_v18, %v1805_v19 }
 0x619   :  { %v1553_v26 = vpack.c.bf16 %v882_v24, %v881_v20  ;;  %v1809_v27 = vpop.permute.xlu1 %1808  ;;  %v1551_v28 = vpack.c.bf16 %v890_v25, %v889_v21 }
 0x61a   :  { %v1811_v31 = vunpack.i.h.bf16 %v1809_v27  ;;  %v1810_v32 = vunpack.i.l.bf16 %v1809_v27 }
 0x61b   :  { %1552 = vmatprep.subr.bf16.mxu0 %v1551_v28 }
 0x61c   :  { %v900_v34 = vsel %vm39_vm1, %v1810_v32, %v1811_v31  ;;  %1554 = vmatpush1.bf16.msra.mxu0 %v1553_v26  ;;  %v908_v37 = vsel %vm39_vm1, %v1811_v31, %v1810_v32 }
 0x61d   :  { %v1557_v38 = vpack.c.bf16 %v900_v34, %v899_v33  ;;  %v1555_v30 = vpack.c.bf16 %v908_v37, %v907_v36 }
 0x61f   :  { %1556 = vmatprep.subr.bf16.mxu0 %v1555_v30 }
 0x620   :  { %1558 = vmatpush1.bf16.msra.mxu0 %v1557_v38 }
 0x621   :  { %v916_v39 = vpop.permute.xlu0 %915 }
 0x623   :  { %1451 = vmatmul.mubr.msk.f32.vlgmr.msra.gmra.mrb[8].mxu0 %vm222_vm4, %v1986_v40 }
 0x624   :  { %1011 = vmatprep.mubr.f32.mxu0 %v1908_v3 }
 0x625   :  { %v931_v61 = vpop.permute.xlu0 %930 }
 0x627   :  { %1452 = vmatmul.mubr.msk.f32.gmra.mrb[10].mxu0 %vm222_vm4, %v1991_v41 }
 0x628   :  { %1017 = vmatprep.mubr.f32.mxu0 %v1908_v3 }
 0x62a   :  { %v921_v40 = vpop.permute.xlu1 %920 }
 0x62b   :  { %1453 = vmatmul.mubr.msk.f32.gmra.mrb[12].mxu0 %vm222_vm4, %v2000_v43 }
 0x62c   :  { %1023 = vmatprep.mubr.f32.mxu0 %v1908_v3 }
 0x62e   :  { %v926_v43 = vpop.permute.xlu1 %925 }
 0x62f   :  { %1454 = vmatmul.mubr.msk.f32.gmra.mrb[14].mxu0 %vm222_vm4, %v2005_v44 }
 0x630   :  { %1367 = vmatprep.mubr.f32.mxu0 %v1908_v3 }
 0x6f6   :  { %v1007_v46 = vpop.f32.mrb[8].mxu0 }
 0x6f7   :  { %v1008_v47 = vadd.f32 %v1007_v46, %v916_v39  ;;  %v1009_v48 = vpop.f32.mrb[9].mxu0 }
 0x6f8   :  { %v1010_v49 = vadd.f32 %v1009_v48, %v916_v39 }
 0x6fa   :  { %v1013_v50 = vpop.f32.mrb[10].mxu0  ;;  %v1814_v41 = vpack.i.bf16 %v1010_v49, %v1008_v47 }
 0x6fb   :  { %v1014_v51 = vadd.f32 %v1013_v50, %v921_v40  ;;  %v1015_v52 = vpop.f32.mrb[11].mxu0 }
 0x6fc   :  { %v1016_v53 = vadd.f32 %v1015_v52, %v921_v40  ;;  %1815 = vrot.lane.b32.xlu1 %v1814_v41, %s1909_s13 }
 0x6fd   :  { %v1561_v4 = vpack.c.bf16 %v1014_v51, %v1008_v47 }
 0x6fe   :  { %v1019_v57 = vpop.f32.mrb[12].mxu0  ;;  %v1819_v58 = vpack.i.bf16 %v1016_v53, %v1014_v51  ;;  %v1559_v44 = vpack.c.bf16 %v1016_v53, %v1010_v49 }
 0x6ff   :  { %v1020_v6 = vadd.f32 %v1019_v57, %v926_v43  ;;  %v1021_v59 = vpop.f32.mrb[13].mxu0 }
 0x700   :  { %v1022_v60 = vadd.f32 %v1021_v59, %v926_v43  ;;  %1820 = vrot.lane.b32.xlu0 %v1819_v58, %s1909_s13  ;;  %1560 = vmatprep.subr.bf16.mxu1 %v1559_v44 }
 0x701   :  { %1562 = vmatpush1.bf16.msra.mxu1 %v1561_v4 }
 0x702   :  { %v1025_v62 = vpop.f32.mrb[14].mxu0  ;;  %v1824_v63 = vpack.i.bf16 %v1022_v60, %v1020_v6 }
 0x703   :  { %v1026_v0 = vadd.f32 %v1025_v62, %v931_v61  ;;  %v1027_v1 = vpop.f32.mrb[15].mxu0 }
 0x704   :  { %v1028_v2 = vadd.f32 %v1027_v1, %v931_v61  ;;  %1825 = vrot.lane.b32.xlu1 %v1824_v63, %s1909_s13 }
 0x705   :  { %v1565_v7 = vpack.c.bf16 %v1026_v0, %v1020_v6 }
 0x706   :  { %v1834_v8 = vpack.i.bf16 %v1028_v2, %v1026_v0  ;;  %v1563_v9 = vpack.c.bf16 %v1028_v2, %v1022_v60 }
 0x708   :  { %1835 = vrot.lane.b32.xlu0 %v1834_v8, %s1909_s13  ;;  %1830 = vrot.lane.b32.xlu1 %v1814_v41, %s1911_s15 }
 0x709   :  { %1564 = vmatprep.subr.bf16.mxu1 %v1563_v9 }
 0x70a   :  { %1566 = vmatpush1.bf16.msra.mxu1 %v1565_v7 }
 0x70c   :  { %1840 = vrot.lane.b32.xlu0 %v1819_v58, %s1911_s15  ;;  %1845 = vrot.lane.b32.xlu1 %v1824_v63, %s1911_s15 }
 0x710   :  { %1855 = vrot.lane.b32.xlu0 %v1834_v8, %s1911_s15  ;;  %1850 = vrot.lane.b32.xlu1 %v1814_v41, %s1910_s14 }
 0x714   :  { %1860 = vrot.lane.b32.xlu0 %v1819_v58, %s1910_s14  ;;  %1865 = vrot.lane.b32.xlu1 %v1824_v63, %s1910_s14 }
 0x718   :  { %1870 = vrot.lane.b32.xlu0 %v1834_v8, %s1910_s14  ;;  %1152 = vperm.xlu1 %1874, %v2048_v54  }
 0x71c   :  { %1157 = vperm.xlu0 %1875, %v2055_v56   ;;  %1907 = vset.pattern.permute.xlu1 %v1913_v42 }
 0x720   :  { %1906 = vset.pattern.permute.xlu0 %v1913_v42 }
 0x76e   :  { %v1816_v10 = vpop.permute.xlu1 %1815 }
 0x76f   :  { %v1818_v5 = vunpack.i.h.bf16 %v1816_v10  ;;  %v1817_v11 = vunpack.i.l.bf16 %v1816_v10 }
 0x771   :  { %v1054_v55 = vsel %vm19_vm0, %v1817_v11, %v1818_v5  ;;  %v1070_v18 = vsel %vm19_vm0, %v1818_v5, %v1817_v11 }
 0x772   :  { %v1821_v12 = vpop.permute.xlu0 %1820 }
 0x773   :  { %v1823_v13 = vunpack.i.h.bf16 %v1821_v12  ;;  %v1822_v14 = vunpack.i.l.bf16 %v1821_v12 }
 0x775   :  { %v1055_v17 = vsel %vm19_vm0, %v1822_v14, %v1823_v13  ;;  %v1071_v54 = vsel %vm19_vm0, %v1823_v13, %v1822_v14 }
 0x776   :  { %v1569_v19 = vpack.c.bf16 %v1055_v17, %v1054_v55  ;;  %v1826_v56 = vpop.permute.xlu1 %1825  ;;  %v1567_v20 = vpack.c.bf16 %v1071_v54, %v1070_v18 }
 0x777   :  { %v1828_v21 = vunpack.i.h.bf16 %v1826_v56  ;;  %v1827_v42 = vunpack.i.l.bf16 %v1826_v56 }
 0x778   :  { %1568 = vmatprep.subr.bf16.mxu1 %v1567_v20 }
 0x779   :  { %1570 = vmatpush1.bf16.msra.mxu1 %v1569_v19  ;;  %v1056_v28 = vsel %vm19_vm0, %v1827_v42, %v1828_v21  ;;  %v1072_v32 = vsel %vm19_vm0, %v1828_v21, %v1827_v42 }
 0x77a   :  { %v1836_v22 = vpop.permute.xlu0 %1835  ;;  %v1831_v23 = vpop.permute.xlu1 %1830 }
 0x77b   :  { %v1838_v24 = vunpack.i.h.bf16 %v1836_v22  ;;  %v1837_v25 = vunpack.i.l.bf16 %v1836_v22  ;;  %v1833_v26 = vunpack.i.h.bf16 %v1831_v23  ;;  %v1832_v27 = vunpack.i.l.bf16 %v1831_v23 }
 0x77d   :  { %v1057_v31 = vsel %vm19_vm0, %v1837_v25, %v1838_v24  ;;  %v1073_v33 = vsel %vm19_vm0, %v1838_v24, %v1837_v25  ;;  %v1090_v46 = vsel %vm29_vm2, %v1832_v27, %v1833_v26  ;;  %v1106_v40 = vsel %vm29_vm2, %v1833_v26, %v1832_v27 }
 0x77e   :  { %v1573_v34 = vpack.c.bf16 %v1057_v31, %v1056_v28  ;;  %v1841_v36 = vpop.permute.xlu0 %1840  ;;  %v1846_v37 = vpop.permute.xlu1 %1845  ;;  %v1571_v38 = vpack.c.bf16 %v1073_v33, %v1072_v32 }
 0x77f   :  { %v1843_v30 = vunpack.i.h.bf16 %v1841_v36  ;;  %v1842_v39 = vunpack.i.l.bf16 %v1841_v36  ;;  %v1848_v48 = vunpack.i.h.bf16 %v1846_v37  ;;  %v1847_v49 = vunpack.i.l.bf16 %v1846_v37 }
 0x780   :  { %1572 = vmatprep.subr.bf16.mxu1 %v1571_v38 }
 0x781   :  { %v1091_v47 = vsel %vm29_vm2, %v1842_v39, %v1843_v30  ;;  %1574 = vmatpush1.bf16.msra.mxu1 %v1573_v34  ;;  %v1107_v50 = vsel %vm29_vm2, %v1843_v30, %v1842_v39  ;;  %v1092_v44 = vsel %vm29_vm2, %v1847_v49, %v1848_v48  ;;  %v1108_v59 = vsel %vm29_vm2, %v1848_v48, %v1847_v49 }
 0x782   :  { %v1577_v41 = vpack.c.bf16 %v1091_v47, %v1090_v46  ;;  %v1856_v51 = vpop.permute.xlu0 %1855  ;;  %v1851_v52 = vpop.permute.xlu1 %1850  ;;  %v1575_v53 = vpack.c.bf16 %v1107_v50, %v1106_v40 }
 0x783   :  { %v1858_v43 = vunpack.i.h.bf16 %v1856_v51  ;;  %v1857_v4 = vunpack.i.l.bf16 %v1856_v51  ;;  %v1853_v57 = vunpack.i.h.bf16 %v1851_v52  ;;  %v1852_v58 = vunpack.i.l.bf16 %v1851_v52 }
 0x784   :  { %1576 = vmatprep.subr.bf16.mxu1 %v1575_v53 }
 0x785   :  { %v1093_v6 = vsel %vm29_vm2, %v1857_v4, %v1858_v43  ;;  %1578 = vmatpush1.bf16.msra.mxu1 %v1577_v41  ;;  %v1109_v60 = vsel %vm29_vm2, %v1858_v43, %v1857_v4  ;;  %v1126_v7 = vsel %vm39_vm1, %v1852_v58, %v1853_v57  ;;  %v1142_v8 = vsel %vm39_vm1, %v1853_v57, %v1852_v58 }
 0x786   :  { %v1581_v61 = vpack.c.bf16 %v1093_v6, %v1092_v44  ;;  %v1861_v62 = vpop.permute.xlu0 %1860  ;;  %v1866_v63 = vpop.permute.xlu1 %1865  ;;  %v1579_v0 = vpack.c.bf16 %v1109_v60, %v1108_v59 }
 0x787   :  { %v1863_v1 = vunpack.i.h.bf16 %v1861_v62  ;;  %v1862_v2 = vunpack.i.l.bf16 %v1861_v62  ;;  %v1868_v10 = vunpack.i.h.bf16 %v1866_v63  ;;  %v1867_v5 = vunpack.i.l.bf16 %v1866_v63 }
 0x788   :  { %1580 = vmatprep.subr.bf16.mxu1 %v1579_v0 }
 0x789   :  { %v1127_v9 = vsel %vm39_vm1, %v1862_v2, %v1863_v1  ;;  %1582 = vmatpush1.bf16.msra.mxu1 %v1581_v61  ;;  %v1143_v11 = vsel %vm39_vm1, %v1863_v1, %v1862_v2  ;;  %v1128_v18 = vsel %vm39_vm1, %v1867_v5, %v1868_v10  ;;  %v1144_v19 = vsel %vm39_vm1, %v1868_v10, %v1867_v5 }
 0x78a   :  { %v1585_v12 = vpack.c.bf16 %v1127_v9, %v1126_v7  ;;  %v1871_v13 = vpop.permute.xlu0 %1870  ;;  %v1583_v14 = vpack.c.bf16 %v1143_v11, %v1142_v8 }
 0x78b   :  { %v1873_v55 = vunpack.i.h.bf16 %v1871_v13  ;;  %v1872_v17 = vunpack.i.l.bf16 %v1871_v13 }
 0x78c   :  { %1584 = vmatprep.subr.bf16.mxu1 %v1583_v14 }
 0x78d   :  { %v1129_v54 = vsel %vm39_vm1, %v1872_v17, %v1873_v55  ;;  %1586 = vmatpush1.bf16.msra.mxu1 %v1585_v12  ;;  %v1145_v56 = vsel %vm39_vm1, %v1873_v55, %v1872_v17 }
 0x78e   :  { %v1589_v20 = vpack.c.bf16 %v1129_v54, %v1128_v18  ;;  %v1587_v21 = vpack.c.bf16 %v1145_v56, %v1144_v19 }
 0x790   :  { %1588 = vmatprep.subr.bf16.mxu1 %v1587_v21 }
 0x791   :  { %1590 = vmatpush1.bf16.msra.mxu1 %v1589_v20 }
 0x794   :  { %1225 = vmatmul.mubr.f32.vlgmr.msra.gmra.mrb[14].mxu1 %v2088_v15 }
 0x795   :  { %1230 = vmatprep.mubr.f32.mxu1 %v1908_v3 }
 0x797   :  { %v1153_v42 = vpop.permute.xlu1 %1152 }
 0x798   :  { %1231 = vmatmul.mubr.f32.gmra.mrb[16].mxu1 %v2095_v16 }
 0x79b   :  { %v1158_v26 = vpop.permute.xlu0 %1157 }
 0x867   :  { %v1226_v22 = vpop.f32.mrb[14].mxu1 }
 0x868   :  { %v1227_v23 = vadd.f32 %v1226_v22, %v1153_v42  ;;  %v1228_v24 = vpop.f32.mrb[15].mxu1 }
 0x869   :  { %v1229_v25 = vadd.f32 %v1228_v24, %v1153_v42 }
 0x86b   :  { %v1232_v27 = vpop.f32.mrb[16].mxu1  ;;  %v1881_v28 = vpack.i.bf16 %v1229_v25, %v1227_v23 }
 0x86c   :  { %v1233_v31 = vadd.f32 %v1232_v27, %v1158_v26  ;;  %v1234_v32 = vpop.f32.mrb[17].mxu1 }
 0x86d   :  { %v1235_v33 = vadd.f32 %v1234_v32, %v1158_v26  ;;  %1882 = vrot.lane.b32.xlu0 %v1881_v28, %s1911_s15  ;;  %1877 = vrot.lane.b32.xlu1 %v1881_v28, %s1909_s13 }
 0x86e   :  { %v1593_v15 = vpack.c.bf16 %v1233_v31, %v1227_v23 }
 0x86f   :  { %v1591_v34 = vpack.c.bf16 %v1235_v33, %v1229_v25  ;;  %v1891_v3 = vpack.i.bf16 %v1235_v33, %v1233_v31 }
 0x871   :  { %1592 = vmatprep.subr.bf16.mxu0 %v1591_v34  ;;  %1887 = vrot.lane.b32.xlu0 %v1881_v28, %s1910_s14 }
 0x872   :  { %1892 = vrot.lane.b32.xlu1 %v1891_v3, %s1909_s13  ;;  %1594 = vmatpush1.bf16.msra.mxu0 %v1593_v15  ;;  %s1916_s13 = smov 124  }
 0x875   :  { %590 = vperm.xlu0 %1906, %v2144_v35  }
 0x876   :  { %1897 = vrot.lane.b32.xlu1 %v1891_v3, %s1911_s15 }
 0x87a   :  { %1902 = vrot.lane.b32.xlu1 %v1891_v3, %s1910_s14  ;;  %s1917_s14 = smov 120  }
 0x87e   :  { %1298 = vperm.xlu1 %1907, %v2144_v35  }
 0x8df   :  { %v1878_v16 = vpop.permute.xlu1 %1877  ;;  %v1883_v36 = vpop.permute.xlu0 %1882 }
 0x8e0   :  { %v1880_v37 = vunpack.i.h.bf16 %v1878_v16  ;;  %v1879_v38 = vunpack.i.l.bf16 %v1878_v16  ;;  %v1885_v40 = vunpack.i.h.bf16 %v1883_v36  ;;  %v1884_v47 = vunpack.i.l.bf16 %v1883_v36 }
 0x8e2   :  { %v1249_v48 = vsel %vm19_vm0, %v1879_v38, %v1880_v37  ;;  %v1257_v50 = vsel %vm19_vm0, %v1880_v37, %v1879_v38  ;;  %v1267_v58 = vsel %vm29_vm2, %v1884_v47, %v1885_v40  ;;  %v1275_v44 = vsel %vm29_vm2, %v1885_v40, %v1884_v47 }
 0x8e3   :  { %v1888_v51 = vpop.permute.xlu0 %1887 }
 0x8e4   :  { %v1893_v30 = vpop.permute.xlu1 %1892  ;;  %v1890_v6 = vunpack.i.h.bf16 %v1888_v51  ;;  %v1889_v59 = vunpack.i.l.bf16 %v1888_v51 }
 0x8e5   :  { %v1895_v39 = vunpack.i.h.bf16 %v1893_v30  ;;  %v1894_v46 = vunpack.i.l.bf16 %v1893_v30 }
 0x8e6   :  { %v1285_v7 = vsel %vm39_vm1, %v1889_v59, %v1890_v6  ;;  %v1293_v9 = vsel %vm39_vm1, %v1890_v6, %v1889_v59 }
 0x8e7   :  { %v1250_v49 = vsel %vm19_vm0, %v1894_v46, %v1895_v39  ;;  %v1258_v41 = vsel %vm19_vm0, %v1895_v39, %v1894_v46  ;;  %vm724_vm0 = vcmask 130048  }
 0x8e8   :  { %v1597_v52 = vpack.c.bf16 %v1250_v49, %v1249_v48  ;;  %v1898_v53 = vpop.permute.xlu1 %1897  ;;  %v1595_v43 = vpack.c.bf16 %v1258_v41, %v1257_v50 }
 0x8e9   :  { %v1900_v4 = vunpack.i.h.bf16 %v1898_v53  ;;  %v1899_v57 = vunpack.i.l.bf16 %v1898_v53 }
 0x8ea   :  { %1596 = vmatprep.subr.bf16.mxu0 %v1595_v43 }
 0x8eb   :  { %v1268_v60 = vsel %vm29_vm2, %v1899_v57, %v1900_v4  ;;  %1598 = vmatpush1.bf16.msra.mxu0 %v1597_v52  ;;  %v1276_v61 = vsel %vm29_vm2, %v1900_v4, %v1899_v57 }
 0x8ec   :  { %v1601_v62 = vpack.c.bf16 %v1268_v60, %v1267_v58  ;;  %v1903_v63 = vpop.permute.xlu1 %1902  ;;  %v1599_v0 = vpack.c.bf16 %v1276_v61, %v1275_v44 }
 0x8ed   :  { %v1905_v1 = vunpack.i.h.bf16 %v1903_v63  ;;  %v1904_v2 = vunpack.i.l.bf16 %v1903_v63 }
 0x8ee   :  { %1600 = vmatprep.subr.bf16.mxu0 %v1599_v0 }
 0x8ef   :  { %v1286_v8 = vsel %vm39_vm1, %v1904_v2, %v1905_v1  ;;  %1602 = vmatpush1.bf16.msra.mxu0 %v1601_v62  ;;  %v1294_v10 = vsel %vm39_vm1, %v1905_v1, %v1904_v2 }
 0x8f0   :  { %v1605_v5 = vpack.c.bf16 %v1286_v8, %v1285_v7  ;;  %v1603_v11 = vpack.c.bf16 %v1294_v10, %v1293_v9 }
 0x8f2   :  { %1604 = vmatprep.subr.bf16.mxu0 %v1603_v11 }
 0x8f3   :  { %1606 = vmatpush1.bf16.msra.mxu0 %v1605_v5 }
 0x8f4   :  { %v591_v12 = vpop.permute.xlu0 %590 }
 0x8f5   :  { %v662_v13 = vadd.f32 %v2158_v29, %v591_v12  ;;  %v664_v14 = vadd.f32 %v2160_v45, %v591_v12 }
 0x8f6   :  { %1460 = vmatmul.mubr.msk.f32.vlgmr.msra.gmra.mrb[16].mxu0 %vm222_vm4, %v2144_v35 }
 0x8f7   :  { %698 = vrot.lane.b32.xlu0 %v664_v14, %s1915_s1  ;;  %667 = vrot.lane.b32.xlu1 %v662_v13, %s1916_s13 }
 0x8fb   :  { %670 = vrot.lane.b32.xlu1 %v662_v13, %s1917_s14 }
 0x8fd   :  { %v1299_v35 = vpop.permute.xlu1 %1298 }
 0x8ff   :  { %673 = vrot.lane.b32.xlu1 %v662_v13, %s1918_s16 }
 0x903   :  { %676 = vrot.lane.b32.xlu1 %v662_v13, %s1911_s15 }
 0x907   :  { %679 = vrot.lane.b32.xlu1 %v662_v13, %s1919_s17 }
 0x90b   :  { %682 = vrot.lane.b32.xlu1 %v662_v13, %s1920_s18 }
 0x90f   :  { %685 = vrot.lane.b32.xlu1 %v662_v13, %s1921_s19 }
 0x913   :  { %689 = vrot.lane.b32.xlu1 %v664_v14, %s1922_s20 }
 0x917   :  { %692 = vrot.lane.b32.xlu1 %v664_v14, %s1923_s21 }
 0x91b   :  { %695 = vrot.lane.b32.xlu1 %v664_v14, %s1924_s22 }
 0x969   :  { %v668_v29 = vpop.permute.xlu1 %667  ;;  %v699_v28 = vpop.permute.xlu0 %698 }
 0x96a   :  { %v702_v56 = vsel %vm701_vm5, %v662_v13, %v668_v29 }
 0x96d   :  { %v671_v45 = vpop.permute.xlu1 %670 }
 0x96e   :  { %v704_v21 = vsel %vm703_vm6, %v702_v56, %v671_v45 }
 0x971   :  { %v674_v55 = vpop.permute.xlu1 %673 }
 0x972   :  { %v706_v42 = vsel %vm705_vm7, %v704_v21, %v674_v55 }
 0x975   :  { %v677_v17 = vpop.permute.xlu1 %676 }
 0x976   :  { %v708_v22 = vsel %vm707_vm8, %v706_v42, %v677_v17 }
 0x979   :  { %v680_v18 = vpop.permute.xlu1 %679 }
 0x97a   :  { %v710_v23 = vsel %vm709_vm9, %v708_v22, %v680_v18 }
 0x97d   :  { %v683_v54 = vpop.permute.xlu1 %682 }
 0x97e   :  { %v712_v25 = vsel %vm711_vm10, %v710_v23, %v683_v54 }
 0x981   :  { %v686_v19 = vpop.permute.xlu1 %685 }
 0x982   :  { %v714_v26 = vsel %vm713_vm11, %v712_v25, %v686_v19 }
 0x985   :  { %v690_v20 = vpop.permute.xlu1 %689 }
 0x986   :  { %v716_v27 = vsel %vm715_vm12, %v714_v26, %v690_v20 }
 0x989   :  { %v693_v24 = vpop.permute.xlu1 %692 }
 0x98a   :  { %v718_v31 = vsel %vm717_vm13, %v716_v27, %v693_v24 }
 0x98d   :  { %v696_v32 = vpop.permute.xlu1 %695 }
 0x98e   :  { %v720_v33 = vsel %vm719_vm14, %v718_v31, %v696_v32  ;;  %v722_v15 = vsel %vm721_vm15, %v696_v32, %v699_v28 }
 0x98f   :  { %723 = vst [vmem:[%s2325_s2] sm:$0xff] %v720_v33  ;;  %725 = vst.msk [vmem:[%s2325_s2 + $0x8] sm:$0xff] %vm724_vm0, %v722_v15 }
 0x9c9   :  { %v1369_v34 = vpop.f32.mrb[16].mxu0 }
 0x9ca   :  { %v1370_v3 = vadd.f32 %v1369_v34, %v1299_v35  ;;  %v1371_v16 = vpop.f32.mrb[17].mxu0 }
 0x9cb   :  { %v1372_v36 = vadd.f32 %v1371_v16, %v1299_v35 }
 0x9cc   :  { %1375 = vrot.lane.b32.xlu0 %v1370_v3, %s1916_s13 }
 0x9cd   :  { %1403 = vrot.lane.b32.xlu1 %v1372_v36, %s1924_s22 }
 0x9d0   :  { %1378 = vrot.lane.b32.xlu0 %v1370_v3, %s1917_s14 }
 0x9d4   :  { %1381 = vrot.lane.b32.xlu0 %v1370_v3, %s1918_s16 }
 0x9d8   :  { %1384 = vrot.lane.b32.xlu0 %v1370_v3, %s1911_s15 }
 0x9dc   :  { %1387 = vrot.lane.b32.xlu0 %v1370_v3, %s1919_s17 }
 0x9e0   :  { %1390 = vrot.lane.b32.xlu0 %v1370_v3, %s1920_s18 }
 0x9e4   :  { %1393 = vrot.lane.b32.xlu0 %v1370_v3, %s1921_s19 }
 0x9e8   :  { %1397 = vrot.lane.b32.xlu0 %v1372_v36, %s1922_s20 }
 0x9ec   :  { %1400 = vrot.lane.b32.xlu0 %v1372_v36, %s1923_s21 }
 0x9f0   :  { %1406 = vrot.lane.b32.xlu0 %v1372_v36, %s1915_s1 }
 0xa3e   :  { %v1376_v37 = vpop.permute.xlu0 %1375 }
 0xa3f   :  { %v1409_v48 = vsel %vm701_vm5, %v1370_v3, %v1376_v37  ;;  %v1404_v58 = vpop.permute.xlu1 %1403 }
 0xa42   :  { %v1379_v38 = vpop.permute.xlu0 %1378 }
 0xa43   :  { %v1410_v49 = vsel %vm703_vm6, %v1409_v48, %v1379_v38 }
 0xa46   :  { %v1382_v30 = vpop.permute.xlu0 %1381 }
 0xa47   :  { %v1411_v50 = vsel %vm705_vm7, %v1410_v49, %v1382_v30 }
 0xa4a   :  { %v1385_v39 = vpop.permute.xlu0 %1384 }
 0xa4b   :  { %v1412_v41 = vsel %vm707_vm8, %v1411_v50, %v1385_v39 }
 0xa4e   :  { %v1388_v46 = vpop.permute.xlu0 %1387 }
 0xa4f   :  { %v1413_v52 = vsel %vm709_vm9, %v1412_v41, %v1388_v46 }
 0xa52   :  { %v1391_v40 = vpop.permute.xlu0 %1390 }
 0xa53   :  { %v1414_v53 = vsel %vm711_vm10, %v1413_v52, %v1391_v40 }
 0xa56   :  { %v1394_v47 = vpop.permute.xlu0 %1393 }
 0xa57   :  { %v1415_v43 = vsel %vm713_vm11, %v1414_v53, %v1394_v47 }
 0xa5a   :  { %v1398_v51 = vpop.permute.xlu0 %1397 }
 0xa5b   :  { %v1416_v4 = vsel %vm715_vm12, %v1415_v43, %v1398_v51 }
 0xa5e   :  { %v1401_v57 = vpop.permute.xlu0 %1400 }
 0xa5f   :  { %v1417_v44 = vsel %vm717_vm13, %v1416_v4, %v1401_v57 }
 0xa60   :  { %v1418_v6 = vsel %vm719_vm14, %v1417_v44, %v1404_v58 }
 0xa61   :  { %1461 = vst [vmem:[%s2325_s2 + $0x10] sm:$0xff] %v1418_v6 }
 0xa62   :  { %v1407_v59 = vpop.permute.xlu0 %1406 }
 0xa63   :  { %v1419_v60 = vsel %vm721_vm15, %v1404_v58, %v1407_v59 }
 0xa64   :  { %1462 = vst.msk [vmem:[%s2325_s2 + $0x18] sm:$0xff] %vm724_vm0, %v1419_v60 }

</bundles_post_ra>
